<compile_context>
chip_gen: v7x
topology: tpu7x:2x2x1
jax: 0.10.0
libtpu: 0.0.40
codegen_flags: <defaults>
</compile_context>

<pallas_src>
import jax
import jax.numpy as jnp
from jax.experimental import pallas as pl
from jax.experimental.pallas import tpu as pltpu

INPUT_DIM = 768
HIDDEN_DIM = 128
OUTPUT_DIM = 3
LANE_PAD = 128                 # lane-dense pad of the 3-wide output
MAX_TK = 2048                  # K-tile cap for the tiled path
FUSE_MAX_N_PAD = 1024          # A kept VMEM-resident (single launch) below this


def _round_up(x, m):
    return ((x + m - 1) // m) * m


def _vmem_limit_bytes():
    cap = 64 * 1024 * 1024
    try:
        info = pltpu.get_tpu_info()
        cap = int(getattr(info, "vmem_capacity_bytes", cap))
    except Exception:
        pass
    # ~25% headroom below physical VMEM; never ask for more than ~96 MiB
    return int(min(cap - cap // 4, 96 * 1024 * 1024))


# ----------------------------- fused kernel (small graphs) -------------------

def fused_gcn_kernel(a_ref, x_ref, dinv_ref, w1_ref, b1_ref, w2_ref, b2_ref,
                     o_ref):
    dinv = dinv_ref[...]                                    # (N, 1) f32
    a = a_ref[...].astype(jnp.bfloat16)                     # exact small ints
    # layer 1: H = relu(D^-1/2 A~ D^-1/2 (X W1^T) + b1)
    xw = jnp.dot(x_ref[...], w1_ref[...], preferred_element_type=jnp.float32)
    xws = (xw * dinv).astype(jnp.bfloat16)                  # pre-scale rows
    h = jnp.dot(a, xws, preferred_element_type=jnp.float32) * dinv + b1_ref[...]
    h = jnp.maximum(h, 0.0)
    # layer 2: OUT = D^-1/2 A~ D^-1/2 (H W2^T) + b2   (lane-dense 128 store)
    hw = jnp.dot(h.astype(jnp.bfloat16), w2_ref[...],
                 preferred_element_type=jnp.float32)
    hws = (hw * dinv).astype(jnp.bfloat16)
    o_ref[...] = (jnp.dot(a, hws, preferred_element_type=jnp.float32) * dinv
                  + b2_ref[...])


# ----------------------------- tiled kernels (large graphs) ------------------

def xw_kernel(x_ref, w1_ref, dinv_ref, xw_ref):
    # per row-tile: XWs = d^{-1/2} * (X @ W1^T)   (bf16 MXU, f32 accumulate)
    xw = jnp.dot(x_ref[...], w1_ref[...], preferred_element_type=jnp.float32)
    xw_ref[...] = (xw * dinv_ref[...]).astype(xw_ref.dtype)


def layer1_kernel(a_ref, xw_ref, dinv_ref, b1_ref, w2_ref, hw_ref, acc_ref):
    # K-tiled: acc += A~[i,k] @ XWs[k];  at last k:
    #   H = relu(d^{-1/2} acc + b1);  HWs = d^{-1/2} (H @ W2pad)
    k = pl.program_id(1)

    @pl.when(k == 0)
    def _():
        acc_ref[...] = jnp.zeros_like(acc_ref)

    acc_ref[...] += jnp.dot(a_ref[...].astype(jnp.bfloat16), xw_ref[...],
                            preferred_element_type=jnp.float32)

    @pl.when(k == pl.num_programs(1) - 1)
    def _():
        dinv = dinv_ref[...]
        h = jnp.maximum(acc_ref[...] * dinv + b1_ref[...], 0.0)
        hw = jnp.dot(h.astype(jnp.bfloat16), w2_ref[...],
                     preferred_element_type=jnp.float32)
        hw_ref[...] = (hw * dinv).astype(hw_ref.dtype)


def layer2_kernel(a_ref, hw_ref, dinv_ref, b2_ref, o_ref, acc_ref):
    # K-tiled: acc += A~[i,k] @ HWs[k];  at last k: OUT = d^{-1/2} acc + b2
    k = pl.program_id(1)

    @pl.when(k == 0)
    def _():
        acc_ref[...] = jnp.zeros_like(acc_ref)

    acc_ref[...] += jnp.dot(a_ref[...].astype(jnp.bfloat16), hw_ref[...],
                            preferred_element_type=jnp.float32)

    @pl.when(k == pl.num_programs(1) - 1)
    def _():
        o_ref[...] = acc_ref[...] * dinv_ref[...] + b2_ref[...]


# ----------------------------- glue (plain JAX) ------------------------------

def build_adjacency_and_scales(edge_index, num_nodes, n_pad):
    """Padded int8 integer adjacency A_tilde and f32 d^{-1/2} row scales.

    A_tilde[i, j] counts edges j -> i plus a self loop on the diagonal
    (duplicate edges intentionally counted multiple times, matching the
    original dense scatter-add / PyG default).  Built directly in the padded
    target dtype so no extra O(N^2) f32 build/cast passes hit HBM.
    """
    src = edge_index[0]
    dst = edge_index[1]
    a = jnp.zeros((n_pad, n_pad), jnp.int8)
    a = a.at[dst, src].add(jnp.ones(src.shape, jnp.int8))
    diag = jnp.arange(num_nodes)
    a = a.at[diag, diag].add(jnp.ones((num_nodes,), jnp.int8))
    # deg_i = (# incoming edges) + 1 (self loop); padded rows get scale 0
    deg = jnp.zeros((num_nodes,), jnp.float32).at[dst].add(1.0) + 1.0
    dinv = jnp.zeros((n_pad, 1), jnp.float32).at[:num_nodes, 0].set(
        jax.lax.rsqrt(deg))
    return a, dinv


# ----------------------------- forward ---------------------------------------

def gnn_forward(x, edge_index, w1, b1, w2, b2, *,
                fuse_max_n_pad=FUSE_MAX_N_PAD):
    n = x.shape[0]
    n128 = _round_up(n, 128)
    fused = n128 <= fuse_max_n_pad

    if fused:
        tm = n_pad = n128
        tk = n_pad
    else:
        tm = 512 if n128 >= 1024 else 128
        n_pad = _round_up(n, tm)
        if n_pad <= MAX_TK:
            tk = n_pad
        else:
            q = n_pad // tm
            tk = max(d * tm for d in range(1, q + 1)
                     if q % d == 0 and d * tm <= MAX_TK)
    n_tiles = n_pad // tm
    k_tiles = n_pad // tk

    a_tilde, dinv = build_adjacency_and_scales(edge_index, n, n_pad)

    x_pad = jnp.zeros((n_pad, INPUT_DIM), jnp.bfloat16)
    x_pad = x_pad.at[:n, :].set(x.astype(jnp.bfloat16))

    # GCNConv stores weight as [out, in]; kernels use X @ W^T
    w1_t = w1.T.astype(jnp.bfloat16)                       # [768, 128]
    b1_2d = b1.reshape(1, HIDDEN_DIM).astype(jnp.float32)

    # zero-pad the 3-wide output projection to a lane-dense 128
    w2_pad = jnp.zeros((HIDDEN_DIM, LANE_PAD), jnp.bfloat16)
    w2_pad = w2_pad.at[:, :OUTPUT_DIM].set(w2.T.astype(jnp.bfloat16))
    b2_pad = jnp.zeros((1, LANE_PAD), jnp.float32)
    b2_pad = b2_pad.at[:, :OUTPUT_DIM].set(b2.astype(jnp.float32))

    vmem = _vmem_limit_bytes()

    if fused:
        out_pad = pl.pallas_call(
            fused_gcn_kernel,
            out_shape=jax.ShapeDtypeStruct((n_pad, LANE_PAD), jnp.float32),
            grid=(1,),
            in_specs=[
                pl.BlockSpec((n_pad, n_pad), lambda i: (0, 0)),
                pl.BlockSpec((n_pad, INPUT_DIM), lambda i: (0, 0)),
                pl.BlockSpec((n_pad, 1), lambda i: (0, 0)),
                pl.BlockSpec((INPUT_DIM, HIDDEN_DIM), lambda i: (0, 0)),
                pl.BlockSpec((1, HIDDEN_DIM), lambda i: (0, 0)),
                pl.BlockSpec((HIDDEN_DIM, LANE_PAD), lambda i: (0, 0)),
                pl.BlockSpec((1, LANE_PAD), lambda i: (0, 0)),
            ],
            out_specs=pl.BlockSpec((n_pad, LANE_PAD), lambda i: (0, 0)),
            compiler_params=pltpu.CompilerParams(
                dimension_semantics=("arbitrary",),
                vmem_limit_bytes=vmem),
            cost_estimate=pl.CostEstimate(
                flops=(2 * n_pad * INPUT_DIM * HIDDEN_DIM
                       + 4 * n_pad * n_pad * HIDDEN_DIM
                       + 2 * n_pad * HIDDEN_DIM * LANE_PAD),
                transcendentals=0,
                bytes_accessed=(n_pad * n_pad
                                + 2 * n_pad * INPUT_DIM
                                + 4 * n_pad * LANE_PAD)),
        )(a_tilde, x_pad, dinv, w1_t, b1_2d, w2_pad, b2_pad)
        return out_pad[:n, :OUTPUT_DIM]

    # ---------------- tiled 3-pass path (large graphs) ----------------
    par = pltpu.CompilerParams(
        dimension_semantics=("parallel",), vmem_limit_bytes=vmem)
    par_arb = pltpu.CompilerParams(
        dimension_semantics=("parallel", "arbitrary"), vmem_limit_bytes=vmem)

    # pass 1: XWs = d^{-1/2} * (X @ W1^T)
    xws = pl.pallas_call(
        xw_kernel,
        out_shape=jax.ShapeDtypeStruct((n_pad, HIDDEN_DIM), jnp.bfloat16),
        grid=(n_tiles,),
        in_specs=[
            pl.BlockSpec((tm, INPUT_DIM), lambda i: (i, 0)),
            pl.BlockSpec((INPUT_DIM, HIDDEN_DIM), lambda i: (0, 0)),
            pl.BlockSpec((tm, 1), lambda i: (i, 0)),
        ],
        out_specs=pl.BlockSpec((tm, HIDDEN_DIM), lambda i: (i, 0)),
        compiler_params=par,
        cost_estimate=pl.CostEstimate(
            flops=2 * n_pad * INPUT_DIM * HIDDEN_DIM,
            transcendentals=0,
            bytes_accessed=2 * (n_pad * INPUT_DIM + INPUT_DIM * HIDDEN_DIM
                                + n_pad * HIDDEN_DIM)),
    )(x_pad, w1_t, dinv)

    # pass 2: HWs = d^{-1/2} * (relu(d^{-1/2} (A~ @ XWs) + b1) @ W2pad)
    hws = pl.pallas_call(
        layer1_kernel,
        out_shape=jax.ShapeDtypeStruct((n_pad, LANE_PAD), jnp.bfloat16),
        grid=(n_tiles, k_tiles),
        in_specs=[
            pl.BlockSpec((tm, tk), lambda i, k: (i, k)),
            pl.BlockSpec((tk, HIDDEN_DIM), lambda i, k: (k, 0)),
            pl.BlockSpec((tm, 1), lambda i, k: (i, 0)),
            pl.BlockSpec((1, HIDDEN_DIM), lambda i, k: (0, 0)),
            pl.BlockSpec((HIDDEN_DIM, LANE_PAD), lambda i, k: (0, 0)),
        ],
        out_specs=pl.BlockSpec((tm, LANE_PAD), lambda i, k: (i, 0)),
        scratch_shapes=[pltpu.VMEM((tm, LANE_PAD), jnp.float32)],
        compiler_params=par_arb,
        cost_estimate=pl.CostEstimate(
            flops=(2 * n_pad * n_pad * HIDDEN_DIM
                   + 2 * n_pad * HIDDEN_DIM * LANE_PAD),
            transcendentals=0,
            bytes_accessed=(n_pad * n_pad + 2 * n_pad * HIDDEN_DIM
                            + 2 * n_pad * LANE_PAD)),
    )(a_tilde, xws, dinv, b1_2d, w2_pad)

    # pass 3: OUT = d^{-1/2} * (A~ @ HWs) + b2pad   (f32, lane-dense store)
    out_pad = pl.pallas_call(
        layer2_kernel,
        out_shape=jax.ShapeDtypeStruct((n_pad, LANE_PAD), jnp.float32),
        grid=(n_tiles, k_tiles),
        in_specs=[
            pl.BlockSpec((tm, tk), lambda i, k: (i, k)),
            pl.BlockSpec((tk, LANE_PAD), lambda i, k: (k, 0)),
            pl.BlockSpec((tm, 1), lambda i, k: (i, 0)),
            pl.BlockSpec((1, LANE_PAD), lambda i, k: (0, 0)),
        ],
        out_specs=pl.BlockSpec((tm, LANE_PAD), lambda i, k: (i, 0)),
        scratch_shapes=[pltpu.VMEM((tm, LANE_PAD), jnp.float32)],
        compiler_params=par_arb,
        cost_estimate=pl.CostEstimate(
            flops=2 * n_pad * n_pad * LANE_PAD,
            transcendentals=0,
            bytes_accessed=(n_pad * n_pad + 2 * n_pad * LANE_PAD
                            + 4 * n_pad * LANE_PAD)),
    )(a_tilde, hws, dinv, b2_pad)

    return out_pad[:n, :OUTPUT_DIM]


# ----------------------------- reference & test ------------------------------

def gnn_reference(x, edge_index, w1, b1, w2, b2):
    n = x.shape[0]
    src, dst = edge_index[0], edge_index[1]
    a = jnp.zeros((n, n), jnp.float32).at[dst, src].add(1.0)
    a = a + jnp.eye(n, dtype=jnp.float32)
    deg = jnp.sum(a, axis=1)
    dis = jnp.where(deg > 0, jax.lax.rsqrt(deg), 0.0)
    a_hat = dis[:, None] * a * dis[None, :]
    h = jnp.maximum(a_hat @ (x @ w1.T) + b1, 0.0)
    return a_hat @ (h @ w2.T) + b2


if __name__ == "__main__":
    key = jax.random.PRNGKey(0)
    k_x, k_e, k_w1, k_w2 = jax.random.split(key, 4)

    num_nodes = 64
    num_edges = 256

    x = jax.random.normal(k_x, (num_nodes, INPUT_DIM), jnp.float32)
    edge_index = jax.random.randint(k_e, (2, num_edges), 0, num_nodes,
                                    jnp.int32)

    # GCNConv weight shape convention: [out_features, in_features].
    w1 = jax.random.normal(k_w1, (HIDDEN_DIM, INPUT_DIM), jnp.float32) * (
        1.0 / jnp.sqrt(INPUT_DIM))
    b1 = jnp.zeros((HIDDEN_DIM,), jnp.float32)
    w2 = jax.random.normal(k_w2, (OUTPUT_DIM, HIDDEN_DIM), jnp.float32) * (
        1.0 / jnp.sqrt(HIDDEN_DIM))
    b2 = jnp.zeros((OUTPUT_DIM,), jnp.float32)

    ref = gnn_reference(x, edge_index, w1, b1, w2, b2)

    # default path at this size: fused single-launch kernel (A resident)
    out_fused = jax.block_until_ready(
        gnn_forward(x, edge_index, w1, b1, w2, b2))
    # also exercise the K-tiled 3-pass path used for large graphs
    out_tiled = jax.block_until_ready(
        gnn_forward(x, edge_index, w1, b1, w2, b2, fuse_max_n_pad=0))

    assert out_fused.shape == (num_nodes, OUTPUT_DIM), out_fused.shape
    assert out_tiled.shape == (num_nodes, OUTPUT_DIM), out_tiled.shape
    # X/W/H are bf16 on the MXU (f32 accumulation); A_tilde is exact int8.
    assert jnp.allclose(out_fused, ref, atol=3e-2, rtol=3e-2), float(
        jnp.max(jnp.abs(out_fused - ref)))
    assert jnp.allclose(out_tiled, ref, atol=3e-2, rtol=3e-2), float(
        jnp.max(jnp.abs(out_tiled - ref)))

    print("KERNEL_OK")
</pallas_src>

<mosaic_0001>
module attributes {stable_mosaic.version = 11 : i64} {
  func.func @fused_gcn_kernel(%arg0: i32, %arg1: memref<128x128xi8, #tpu.memory_space<vmem>>, %arg2: memref<128x768xbf16, #tpu.memory_space<vmem>>, %arg3: memref<128x1xf32, #tpu.memory_space<vmem>>, %arg4: memref<768x128xbf16, #tpu.memory_space<vmem>>, %arg5: memref<1x128xf32, #tpu.memory_space<vmem>>, %arg6: memref<128x128xbf16, #tpu.memory_space<vmem>>, %arg7: memref<1x128xf32, #tpu.memory_space<vmem>>, %arg8: memref<128x128xf32, #tpu.memory_space<vmem>>) attributes {dimension_semantics = [#tpu.dimension_semantics<arbitrary>], iteration_bounds = array<i64: 1>, scalar_prefetch = 0 : i64, scratch_operands = 0 : i64, tpu.core_type = #tpu.core_type<tc>, window_params = [{pipeline_mode = #tpu.pipeline_mode<synchronous>, transform_indices = @transform_0, window_bounds = array<i64: 128, 128>}, {pipeline_mode = #tpu.pipeline_mode<synchronous>, transform_indices = @transform_1, window_bounds = array<i64: 128, 768>}, {pipeline_mode = #tpu.pipeline_mode<synchronous>, transform_indices = @transform_2, window_bounds = array<i64: 128, 1>}, {pipeline_mode = #tpu.pipeline_mode<synchronous>, transform_indices = @transform_3, window_bounds = array<i64: 768, 128>}, {pipeline_mode = #tpu.pipeline_mode<synchronous>, transform_indices = @transform_4, window_bounds = array<i64: 1, 128>}, {pipeline_mode = #tpu.pipeline_mode<synchronous>, transform_indices = @transform_5, window_bounds = array<i64: 128, 128>}, {pipeline_mode = #tpu.pipeline_mode<synchronous>, transform_indices = @transform_6, window_bounds = array<i64: 1, 128>}, {pipeline_mode = #tpu.pipeline_mode<synchronous>, transform_indices = @transform_7, window_bounds = array<i64: 128, 128>}]} {
    %c0 = arith.constant 0 : index
    %c0_0 = arith.constant 0 : index
    %0 = vector.load %arg3[%c0, %c0_0] : memref<128x1xf32, #tpu.memory_space<vmem>>, vector<128x1xf32>
    %c0_1 = arith.constant 0 : index
    %c0_2 = arith.constant 0 : index
    %1 = vector.load %arg1[%c0_1, %c0_2] : memref<128x128xi8, #tpu.memory_space<vmem>>, vector<128x128xi8>
    %2 = arith.sitofp %1 : vector<128x128xi8> to vector<128x128xbf16>
    %c0_3 = arith.constant 0 : index
    %c0_4 = arith.constant 0 : index
    %3 = vector.load %arg2[%c0_3, %c0_4] : memref<128x768xbf16, #tpu.memory_space<vmem>>, vector<128x768xbf16>
    %c0_5 = arith.constant 0 : index
    %c0_6 = arith.constant 0 : index
    %4 = vector.load %arg4[%c0_5, %c0_6] : memref<768x128xbf16, #tpu.memory_space<vmem>>, vector<768x128xbf16>
    %cst = arith.constant dense<0.000000e+00> : vector<128x128xf32>
    %5 = tpu.matmul %3, %4, %cst {dimension_numbers = #tpu.dot_dimension_numbers<[1], [0], [0], [1], [0, 0, 1, 1], [], []>} : vector<128x768xbf16>, vector<768x128xbf16>, vector<128x128xf32> -> vector<128x128xf32>
    %6 = vector.broadcast %0 : vector<128x1xf32> to vector<128x128xf32>
    %7 = arith.mulf %5, %6 : vector<128x128xf32>
    %8 = arith.truncf %7 : vector<128x128xf32> to vector<128x128xbf16>
    %cst_7 = arith.constant dense<0.000000e+00> : vector<128x128xf32>
    %9 = tpu.matmul %2, %8, %cst_7 {dimension_numbers = #tpu.dot_dimension_numbers<[1], [0], [0], [1], [0, 0, 1, 1], [], []>} : vector<128x128xbf16>, vector<128x128xbf16>, vector<128x128xf32> -> vector<128x128xf32>
    %10 = vector.broadcast %0 : vector<128x1xf32> to vector<128x128xf32>
    %11 = arith.mulf %9, %10 : vector<128x128xf32>
    %c0_8 = arith.constant 0 : index
    %c0_9 = arith.constant 0 : index
    %12 = vector.load %arg5[%c0_8, %c0_9] : memref<1x128xf32, #tpu.memory_space<vmem>>, vector<1x128xf32>
    %13 = vector.broadcast %12 : vector<1x128xf32> to vector<128x128xf32>
    %14 = arith.addf %11, %13 : vector<128x128xf32>
    %cst_10 = arith.constant 0.000000e+00 : f32
    %15 = vector.broadcast %cst_10 : f32 to vector<128x128xf32>
    %16 = arith.maximumf %14, %15 : vector<128x128xf32>
    %17 = arith.truncf %16 : vector<128x128xf32> to vector<128x128xbf16>
    %c0_11 = arith.constant 0 : index
    %c0_12 = arith.constant 0 : index
    %18 = vector.load %arg6[%c0_11, %c0_12] : memref<128x128xbf16, #tpu.memory_space<vmem>>, vector<128x128xbf16>
    %cst_13 = arith.constant dense<0.000000e+00> : vector<128x128xf32>
    %19 = tpu.matmul %17, %18, %cst_13 {dimension_numbers = #tpu.dot_dimension_numbers<[1], [0], [0], [1], [0, 0, 1, 1], [], []>} : vector<128x128xbf16>, vector<128x128xbf16>, vector<128x128xf32> -> vector<128x128xf32>
    %20 = vector.broadcast %0 : vector<128x1xf32> to vector<128x128xf32>
    %21 = arith.mulf %19, %20 : vector<128x128xf32>
    %22 = arith.truncf %21 : vector<128x128xf32> to vector<128x128xbf16>
    %cst_14 = arith.constant dense<0.000000e+00> : vector<128x128xf32>
    %23 = tpu.matmul %2, %22, %cst_14 {dimension_numbers = #tpu.dot_dimension_numbers<[1], [0], [0], [1], [0, 0, 1, 1], [], []>} : vector<128x128xbf16>, vector<128x128xbf16>, vector<128x128xf32> -> vector<128x128xf32>
    %24 = vector.broadcast %0 : vector<128x1xf32> to vector<128x128xf32>
    %25 = arith.mulf %23, %24 : vector<128x128xf32>
    %c0_15 = arith.constant 0 : index
    %c0_16 = arith.constant 0 : index
    %26 = vector.load %arg7[%c0_15, %c0_16] : memref<1x128xf32, #tpu.memory_space<vmem>>, vector<1x128xf32>
    %27 = vector.broadcast %26 : vector<1x128xf32> to vector<128x128xf32>
    %28 = arith.addf %25, %27 : vector<128x128xf32>
    %c0_17 = arith.constant 0 : index
    %c0_18 = arith.constant 0 : index
    %29 = vector.load %arg8[%c0_17, %c0_18] : memref<128x128xf32, #tpu.memory_space<vmem>>, vector<128x128xf32>
    tpu.vector_store %arg8[%c0_17, %c0_18], %28 {strides = array<i32>} : memref<128x128xf32, #tpu.memory_space<vmem>>, vector<128x128xf32>,
    return
  }
  func.func @transform_0(%arg0: i32) -> (i32, i32) {
    %c0_i32 = arith.constant 0 : i32
    %c0_i32_0 = arith.constant 0 : i32
    %c0_i32_1 = arith.constant 0 : i32
    return %c0_i32, %c0_i32_0 : i32, i32
  }
  func.func @transform_1(%arg0: i32) -> (i32, i32) {
    %c0_i32 = arith.constant 0 : i32
    %c0_i32_0 = arith.constant 0 : i32
    %c0_i32_1 = arith.constant 0 : i32
    return %c0_i32, %c0_i32_0 : i32, i32
  }
  func.func @transform_2(%arg0: i32) -> (i32, i32) {
    %c0_i32 = arith.constant 0 : i32
    %c0_i32_0 = arith.constant 0 : i32
    %c0_i32_1 = arith.constant 0 : i32
    return %c0_i32, %c0_i32_0 : i32, i32
  }
  func.func @transform_3(%arg0: i32) -> (i32, i32) {
    %c0_i32 = arith.constant 0 : i32
    %c0_i32_0 = arith.constant 0 : i32
    %c0_i32_1 = arith.constant 0 : i32
    return %c0_i32, %c0_i32_0 : i32, i32
  }
  func.func @transform_4(%arg0: i32) -> (i32, i32) {
    %c0_i32 = arith.constant 0 : i32
    %c0_i32_0 = arith.constant 0 : i32
    %c0_i32_1 = arith.constant 0 : i32
    return %c0_i32, %c0_i32_0 : i32, i32
  }
  func.func @transform_5(%arg0: i32) -> (i32, i32) {
    %c0_i32 = arith.constant 0 : i32
    %c0_i32_0 = arith.constant 0 : i32
    %c0_i32_1 = arith.constant 0 : i32
    return %c0_i32, %c0_i32_0 : i32, i32
  }
  func.func @transform_6(%arg0: i32) -> (i32, i32) {
    %c0_i32 = arith.constant 0 : i32
    %c0_i32_0 = arith.constant 0 : i32
    %c0_i32_1 = arith.constant 0 : i32
    return %c0_i32, %c0_i32_0 : i32, i32
  }
  func.func @transform_7(%arg0: i32) -> (i32, i32) {
    %c0_i32 = arith.constant 0 : i32
    %c0_i32_0 = arith.constant 0 : i32
    %c0_i32_1 = arith.constant 0 : i32
    return %c0_i32, %c0_i32_0 : i32, i32
  }
}

</mosaic_0001>

<bundles_post_ra>
// kernel: tpu_custom_call.1
= control target key start
LH: loop header
LB: loop body
LE: loop exit
PB: predicated region body
PF: predicated region fallthrough
CT: control target
= control target key end

     0   :  { %12 = vsyncpa [#allocation3], 0  ;;  %s2718_s0 = inlined_call_operand.vmem [shape: s8[128,128], index: 0, kind: input, shape index: {}]   ;;  %s2719_s1 = inlined_call_operand.hbm [shape: bf16[128,768], index: 1, kind: input, shape index: {}]   ;;  %s2720_s2 = inlined_call_operand.vmem [shape: f32[128,1], index: 2, kind: input, shape index: {}]   ;;  %s2721_s3 = inlined_call_operand.hbm [shape: bf16[768,128], index: 3, kind: input, shape index: {}]   ;;  %s2722_s4 = inlined_call_operand.vmem [shape: f32[1,128], index: 4, kind: input, shape index: {}]   ;;  %s2723_s5 = inlined_call_operand.vmem [shape: bf16[128,128], index: 5, kind: input, shape index: {}]   ;;  %s2724_s6 = inlined_call_operand.vmem [shape: f32[1,128], index: 6, kind: input, shape index: {}]   ;;  %s2725_s7 = inlined_call_operand.hbm [shape: f32[128,128], index: 7, kind: output, shape index: {}]  }
   0x1   :  { %13 = vsyncpa [#allocation6], 0 }
   0x2   :  { %14 = vsyncpa [#allocation4], 0  ;;  %s2336_s24 = smov [#allocation2]   ;;  %s2264_s28 = scalar_lea.hbm %s2719_s1, 6144 }
   0x3   :  { %s22_s25 = sshll.u32 %s2336_s24, 4  ;;  %p2265_p0 = scmp.ne.s32.totalorder %s2719_s1, %s2264_s28  ;;  %s23_s25 = int_to_ptr.vmem [resolvable:$true] %s22_s25 }
   0x4   :  { %p2268_p1 = scmp.lt.u32.totalorder %s2264_s28, %s2719_s1 }
   0x6   :  { %p2270_p2 = pnand %p2268_p1, %p2265_p0 }
   0x8   :  { %2273 = shalt.err (!%p2270_p2)
}
   0x9   :  { %s2274_s10 = scalar_lea.vmem %s23_s25, 6144  ;;  %p2279_p4 = scmp.lt.s32.totalorder %s23_s25, %s23_s25 }
   0xa   :  { %p2275_p3 = scmp.ne.s32.totalorder %s23_s25, %s2274_s10  ;;  %p2280_p5 = scmp.lt.s32.totalorder %s2274_s10, %s2274_s10 }
   0xc   :  { %p2281_p6 = por %p2280_p5, %p2279_p4 }
   0xe   :  { %p2282_p7 = pnand %p2281_p6, %p2275_p3 }
  0x10   :  { %2285 = shalt.err (!%p2282_p7)
}
  0x11   :  { %s2337_s11 = smov 384   ;;  %s2338_s12 = smov 24  }
  0x12   :  { %28 = dma.hbm_to_vmem [thread:$0]  %s2719_s1, 6144, %s23_s25, [#allocation3], %s2337_s11, %s2337_s11, %s2338_s12  }
  0x13   :  { %s2339_s15 = smov [#allocation5]   ;;  %s2286_s19 = scalar_lea.hbm %s2721_s3, 6144 }
  0x14   :  { %s36_s16 = sshll.u32 %s2339_s15, 4  ;;  %p2287_p8 = scmp.ne.s32.totalorder %s2721_s3, %s2286_s19  ;;  %s37_s16 = int_to_ptr.vmem [resolvable:$true] %s36_s16 }
  0x15   :  { %p2290_p9 = scmp.lt.u32.totalorder %s2286_s19, %s2721_s3 }
  0x17   :  { %p2292_p10 = pnand %p2290_p9, %p2287_p8 }
  0x19   :  { %2295 = shalt.err (!%p2292_p10)
}
  0x1a   :  { %s2296_s24 = scalar_lea.vmem %s37_s16, 6144  ;;  %p2301_p12 = scmp.lt.s32.totalorder %s37_s16, %s37_s16 }
  0x1b   :  { %p2297_p11 = scmp.ne.s32.totalorder %s37_s16, %s2296_s24  ;;  %p2302_p13 = scmp.lt.s32.totalorder %s2296_s24, %s2296_s24 }
  0x1d   :  { %p2303_p0 = por %p2302_p13, %p2301_p12 }
  0x1f   :  { %p2304_p1 = pnand %p2303_p0, %p2297_p11 }
  0x21   :  { %2307 = shalt.err (!%p2304_p1)
}
  0x22   :  { %s2340_s1 = smov 64   ;;  %s2341_s25 = smov 4  }
  0x23   :  { %42 = dma.hbm_to_vmem [thread:$0]  %s2721_s3, 6144, %s37_s16, [#allocation6], %s2340_s1, %s2340_s1, %s2341_s25  }
  0x24   :  { %2330 = dma.done.wait [#allocation3], 6144  }
  0x25   :  { %2331 = vsyncadd [#allocation3], 4294961152 }
  0x26   :  { %2332 = dma.done.wait [#allocation6], 6144  }
  0x27   :  { %2333 = vsyncadd [#allocation6], 4294961152  ;;  %v2136_v0 = vld [vmem:[#allocation5 + $0x40] sm:$0xff]   ;;  %v2140_v4 = vld [vmem:[#allocation5 + $0x48] sm:$0xff]   ;;  %v2342_v30 = vmov 0  }
  0x28   :  { %v2137_v1 = vld [vmem:[#allocation5 + $0xc0] sm:$0xff]   ;;  %1772 = vmatprep.subr.bf16.mxu0 %v2136_v0  ;;  %v2141_v5 = vld [vmem:[#allocation5 + $0xc8] sm:$0xff]   ;;  %v2144_v8 = vld [vmem:[#allocation5 + $0x50] sm:$0xff]   ;;  %2134 = vset.pattern.permute.xlu0 %v2342_v30 }
  0x29   :  { %v2138_v2 = vld [vmem:[#allocation5] sm:$0xff]   ;;  %1836 = vmatprep.subr.bf16.mxu1 %v2137_v1  ;;  %v2142_v6 = vld [vmem:[#allocation5 + $0x8] sm:$0xff]   ;;  %v2145_v9 = vld [vmem:[#allocation5 + $0xd0] sm:$0xff]   ;;  %2135 = vset.pattern.permute.xlu1 %v2342_v30 }
  0x2a   :  { %v2139_v3 = vld [vmem:[#allocation5 + $0x80] sm:$0xff]   ;;  %1773 = vmatpush3.bf16.msra.mxu0 %v2138_v2  ;;  %v2143_v7 = vld [vmem:[#allocation5 + $0x88] sm:$0xff]   ;;  %v2146_v10 = vld [vmem:[#allocation5 + $0x10] sm:$0xff]  }
  0x2b   :  { %1837 = vmatpush3.bf16.msra.mxu1 %v2139_v3  ;;  %1774 = vmatprep.subr.bf16.mxu0 %v2140_v4  ;;  %v2147_v11 = vld [vmem:[#allocation5 + $0x90] sm:$0xff]   ;;  %v2148_v12 = vld [vmem:[#allocation5 + $0x58] sm:$0xff]   ;;  %v2152_v16 = vld [vmem:[#allocation5 + $0x60] sm:$0xff]  }
  0x2c   :  { %1838 = vmatprep.subr.bf16.mxu1 %v2141_v5  ;;  %v2149_v13 = vld [vmem:[#allocation5 + $0xd8] sm:$0xff]   ;;  %v2153_v17 = vld [vmem:[#allocation5 + $0xe0] sm:$0xff]   ;;  %v2156_v20 = vld [vmem:[#allocation5 + $0x68] sm:$0xff]  }
  0x2d   :  { %v2150_v14 = vld [vmem:[#allocation5 + $0x18] sm:$0xff]   ;;  %v2154_v18 = vld [vmem:[#allocation5 + $0x20] sm:$0xff]   ;;  %v2157_v21 = vld [vmem:[#allocation5 + $0xe8] sm:$0xff]  }
  0x2e   :  { %1775 = vmatpush3.bf16.msra.mxu0 %v2142_v6  ;;  %v2151_v15 = vld [vmem:[#allocation5 + $0x98] sm:$0xff]   ;;  %v2155_v19 = vld [vmem:[#allocation5 + $0xa0] sm:$0xff]   ;;  %v2158_v22 = vld [vmem:[#allocation5 + $0x28] sm:$0xff]  }
  0x2f   :  { %1839 = vmatpush3.bf16.msra.mxu1 %v2143_v7  ;;  %1776 = vmatprep.subr.bf16.mxu0 %v2144_v8  ;;  %v2159_v23 = vld [vmem:[#allocation5 + $0xa8] sm:$0xff]   ;;  %v2160_v24 = vld [vmem:[#allocation5 + $0x70] sm:$0xff]   ;;  %v2164_v28 = vld [vmem:[#allocation5 + $0x78] sm:$0xff]  }
  0x30   :  { %1840 = vmatprep.subr.bf16.mxu1 %v2145_v9  ;;  %v2161_v25 = vld [vmem:[#allocation5 + $0xf0] sm:$0xff]   ;;  %v2165_v29 = vld [vmem:[#allocation5 + $0xf8] sm:$0xff]   ;;  %v2171_v35 = vld [vmem:[#allocation2 + $0x8] ss:$24 sps:$4 sm:$0xff]  }
  0x31   :  { %v2162_v26 = vld [vmem:[#allocation5 + $0x30] sm:$0xff]   ;;  %v2166_v31 = vld [vmem:[#allocation5 + $0x38] sm:$0xff]   ;;  %v2173_v36 = vld [vmem:[#allocation2 + $0xc] ss:$24 sps:$4 sm:$0xff]  }
  0x32   :  { %1777 = vmatpush3.bf16.msra.mxu0 %v2146_v10  ;;  %v2163_v27 = vld [vmem:[#allocation5 + $0xb0] sm:$0xff]   ;;  %v2167_v32 = vld [vmem:[#allocation5 + $0xb8] sm:$0xff]   ;;  %885 = vmatprep.mubr.bf16.mxu1 %v2173_v36  ;;  %v2182_v42 = vld [vmem:[#allocation2 + $0x6c] ss:$24 sps:$4 sm:$0xff]  }
  0x33   :  { %1841 = vmatpush3.bf16.msra.mxu1 %v2147_v11  ;;  %1778 = vmatprep.subr.bf16.mxu0 %v2148_v12  ;;  %v2168_v33 = vld [vmem:[#allocation2] ss:$24 sps:$4 sm:$0xff]   ;;  %v2170_v34 = vld [vmem:[#allocation2 + $0x4] ss:$24 sps:$4 sm:$0xff]   ;;  %v2174_v37 = vld [vmem:[#allocation2 + $0x34] ss:$24 sps:$4 sm:$0xff]  }
  0x34   :  { %1842 = vmatprep.subr.bf16.mxu1 %v2149_v13  ;;  %788 = vmatprep.mubr.bf16.mxu0 %v2170_v34  ;;  %v2176_v38 = vld [vmem:[#allocation2 + $0x3c] ss:$24 sps:$4 sm:$0xff]   ;;  %v2178_v39 = vld [vmem:[#allocation2 + $0x30] ss:$24 sps:$4 sm:$0xff]   ;;  %v2184_v43 = vld [vmem:[#allocation2 + $0x60] ss:$24 sps:$4 sm:$0xff]  }
  0x35   :  { %v2179_v40 = vld [vmem:[#allocation2 + $0x38] ss:$24 sps:$4 sm:$0xff]   ;;  %v2180_v41 = vld [vmem:[#allocation2 + $0x64] ss:$24 sps:$4 sm:$0xff]   ;;  %v2185_v45 = vld [vmem:[#allocation2 + $0x68] ss:$24 sps:$4 sm:$0xff]  }
  0x36   :  { %1779 = vmatpush3.bf16.msra.mxu0 %v2150_v14  ;;  %v2198_v44 = vld [vmem:[#allocation5 + $0x140] sm:$0xff]   ;;  %v2186_v46 = vld [vmem:[#allocation2 + $0x94] ss:$24 sps:$4 sm:$0xff]   ;;  %v2190_v52 = vld [vmem:[#allocation2 + $0x90] ss:$24 sps:$4 sm:$0xff]  }
  0x37   :  { %1843 = vmatpush3.bf16.msra.mxu1 %v2151_v15  ;;  %1780 = vmatprep.subr.bf16.mxu0 %v2152_v16  ;;  %v2199_v47 = vld [vmem:[#allocation5 + $0x100] sm:$0xff]   ;;  %v2200_v48 = vld [vmem:[#allocation5 + $0x148] sm:$0xff]   ;;  %v2188_v49 = vld [vmem:[#allocation2 + $0x9c] ss:$24 sps:$4 sm:$0xff]  }
  0x38   :  { %1844 = vmatprep.subr.bf16.mxu1 %v2153_v17  ;;  %v2201_v50 = vld [vmem:[#allocation5 + $0x108] sm:$0xff]   ;;  %v2208_v51 = vld [vmem:[#allocation5 + $0x150] sm:$0xff]   ;;  %v2210_v54 = vld [vmem:[#allocation5 + $0x158] sm:$0xff]  }
  0x39   :  { %v2209_v53 = vld [vmem:[#allocation5 + $0x110] sm:$0xff]   ;;  %v2192_v56 = vld [vmem:[#allocation2 + $0xc4] ss:$24 sps:$4 sm:$0xff]   ;;  %v2196_v60 = vld [vmem:[#allocation2 + $0xc0] ss:$24 sps:$4 sm:$0xff]  }
  0x3a   :  { %1781 = vmatpush3.bf16.msra.mxu0 %v2154_v18  ;;  %v2191_v55 = vld [vmem:[#allocation2 + $0x98] ss:$24 sps:$4 sm:$0xff]   ;;  %v2194_v57 = vld [vmem:[#allocation2 + $0xcc] ss:$24 sps:$4 sm:$0xff]   ;;  %v2197_v63 = vld [vmem:[#allocation2 + $0xc8] ss:$24 sps:$4 sm:$0xff]  }
  0x3b   :  { %1845 = vmatpush3.bf16.msra.mxu1 %v2155_v19  ;;  %1782 = vmatprep.subr.bf16.mxu0 %v2156_v20  ;;  %v2211_v58 = vld [vmem:[#allocation5 + $0x118] sm:$0xff]   ;;  %v2218_v59 = vld [vmem:[#allocation5 + $0x160] sm:$0xff]   ;;  %v2220_v62 = vld [vmem:[#allocation5 + $0x168] sm:$0xff]  }
  0x3c   :  { %1846 = vmatprep.subr.bf16.mxu1 %v2157_v21  ;;  %v2219_v61 = vld [vmem:[#allocation5 + $0x120] sm:$0xff]   ;;  %v2202_v0 = vld [vmem:[#allocation2 + $0xf4] ss:$24 sps:$4 sm:$0xff]   ;;  %v2206_v5 = vld [vmem:[#allocation2 + $0xf0] ss:$24 sps:$4 sm:$0xff]  }
  0x3d   :  { %v2204_v1 = vld [vmem:[#allocation2 + $0xfc] ss:$24 sps:$4 sm:$0xff]   ;;  %v2221_v2 = vld [vmem:[#allocation5 + $0x128] sm:$0xff]   ;;  %v2207_v7 = vld [vmem:[#allocation2 + $0xf8] ss:$24 sps:$4 sm:$0xff]  }
  0x3e   :  { %1783 = vmatpush3.bf16.msra.mxu0 %v2158_v22  ;;  %v2228_v3 = vld [vmem:[#allocation5 + $0x170] sm:$0xff]   ;;  %v2230_v6 = vld [vmem:[#allocation5 + $0x178] sm:$0xff]   ;;  %v2214_v9 = vld [vmem:[#allocation2 + $0x12c] ss:$24 sps:$4 sm:$0xff]  }
  0x3f   :  { %1847 = vmatpush3.bf16.msra.mxu1 %v2159_v23  ;;  %1784 = vmatprep.subr.bf16.mxu0 %v2160_v24  ;;  %v2229_v4 = vld [vmem:[#allocation5 + $0x130] sm:$0xff]   ;;  %v2212_v8 = vld [vmem:[#allocation2 + $0x124] ss:$24 sps:$4 sm:$0xff]   ;;  %v2216_v11 = vld [vmem:[#allocation2 + $0x120] ss:$24 sps:$4 sm:$0xff]  }
  0x40   :  { %1848 = vmatprep.subr.bf16.mxu1 %v2161_v25  ;;  %v2231_v10 = vld [vmem:[#allocation5 + $0x138] sm:$0xff]   ;;  %v56_v12 = vld [vmem:[%s2720_s2] sm:$0xff]  ;;  %v58_v13 = vld [vmem:[%s2720_s2 + $0x10] sm:$0xff] }
  0x41   :  { %v2217_v14 = vld [vmem:[#allocation2 + $0x128] ss:$24 sps:$4 sm:$0xff]   ;;  %v2222_v15 = vld [vmem:[#allocation2 + $0x154] ss:$24 sps:$4 sm:$0xff]   ;;  %1049 = vperm.xlu0 %2134, %v56_v12   ;;  %1059 = vperm.xlu1 %2135, %v58_v13   ;;  %v59_v18 = vld [vmem:[%s2720_s2 + $0x18] sm:$0xff] }
  0x42   :  { %1785 = vmatpush3.bf16.msra.mxu0 %v2162_v26  ;;  %v2224_v16 = vld [vmem:[#allocation2 + $0x15c] ss:$24 sps:$4 sm:$0xff]   ;;  %v57_v17 = vld [vmem:[%s2720_s2 + $0x8] sm:$0xff]  ;;  %v60_v19 = vld [vmem:[%s2720_s2 + $0x20] sm:$0xff] }
  0x43   :  { %1849 = vmatpush3.bf16.msra.mxu1 %v2163_v27  ;;  %1786 = vmatprep.subr.bf16.mxu0 %v2164_v28  ;;  %v2226_v20 = vld [vmem:[#allocation2 + $0x150] ss:$24 sps:$4 sm:$0xff]   ;;  %v2234_v23 = vld [vmem:[#allocation2 + $0x14] ss:$24 sps:$4 sm:$0xff]   ;;  %v63_v25 = vld [vmem:[%s2720_s2 + $0x38] sm:$0xff] }
  0x44   :  { %1850 = vmatprep.subr.bf16.mxu1 %v2165_v29  ;;  %v61_v21 = vld [vmem:[%s2720_s2 + $0x28] sm:$0xff]  ;;  %v2227_v22 = vld [vmem:[#allocation2 + $0x158] ss:$24 sps:$4 sm:$0xff]   ;;  %v64_v26 = vld [vmem:[%s2720_s2 + $0x40] sm:$0xff] }
  0x45   :  { %1054 = vperm.xlu0 %2134, %v57_v17   ;;  %1064 = vperm.xlu1 %2135, %v59_v18   ;;  %v62_v24 = vld [vmem:[%s2720_s2 + $0x30] sm:$0xff]  ;;  %v65_v28 = vld [vmem:[%s2720_s2 + $0x48] sm:$0xff]  ;;  %v2235_v29 = vld [vmem:[#allocation2 + $0x44] ss:$24 sps:$4 sm:$0xff]  }
  0x46   :  { %1787 = vmatpush3.bf16.msra.mxu0 %v2166_v31  ;;  %v2232_v27 = vld [vmem:[#allocation2 + $0x10] ss:$24 sps:$4 sm:$0xff]   ;;  %v67_v31 = vld [vmem:[%s2720_s2 + $0x58] sm:$0xff] }
  0x47   :  { %1851 = vmatpush3.bf16.msra.mxu1 %v2167_v32  ;;  %1900 = vmatprep.subr.bf16.mxu0 %v2198_v44  ;;  %v66_v30 = vld [vmem:[%s2720_s2 + $0x50] sm:$0xff]  ;;  %v68_v32 = vld [vmem:[%s2720_s2 + $0x60] sm:$0xff]  ;;  %v69_v34 = vld [vmem:[%s2720_s2 + $0x68] sm:$0xff] }
  0x48   :  { %v70_v36 = vld [vmem:[%s2720_s2 + $0x70] sm:$0xff]  ;;  %v2249_v44 = vld [vmem:[#allocation2 + $0x100] ss:$24 sps:$4 sm:$0xff]  }
  0x49   :  { %789 = vmatmul.mubr.bf16.vlgmr.msra.gmra.mrb[0].mxu0 %v2168_v33  ;;  %1069 = vperm.xlu0 %2134, %v60_v19   ;;  %v2237_v33 = vld [vmem:[#allocation2 + $0x40] ss:$24 sps:$4 sm:$0xff]  }
  0x4a   :  { %886 = vmatmul.mubr.bf16.vlgmr.msra.gmra.mrb[0].mxu1 %v2171_v35  ;;  %796 = vmatprep.mubr.bf16.mxu0 %v2174_v37  ;;  %v2238_v35 = vld [vmem:[#allocation2 + $0x74] ss:$24 sps:$4 sm:$0xff]   ;;  %v71_v37 = vld [vmem:[%s2720_s2 + $0x78] sm:$0xff] }
  0x4b   :  { %893 = vmatprep.mubr.bf16.mxu1 %v2176_v38  ;;  %1901 = vmatpush3.bf16.msra.mxu0 %v2199_v47  ;;  %v2240_v38 = vld [vmem:[#allocation2 + $0x70] ss:$24 sps:$4 sm:$0xff]   ;;  %v2253_v47 = vld [vmem:[#allocation2 + $0x164] ss:$24 sps:$4 sm:$0xff]  }
  0x4c   :  { %1902 = vmatprep.subr.bf16.mxu0 %v2200_v48  ;;  %1074 = vperm.xlu1 %2135, %v61_v21   ;;  %v2255_v48 = vld [vmem:[#allocation2 + $0x160] ss:$24 sps:$4 sm:$0xff]  }
  0x4d   :  { %1079 = vperm.xlu0 %2134, %v62_v24  }
  0x4f   :  { %1903 = vmatpush3.bf16.msra.mxu0 %v2201_v50 }
  0x50   :  { %1904 = vmatprep.subr.bf16.mxu0 %v2208_v51  ;;  %1084 = vperm.xlu1 %2135, %v63_v25  }
  0x51   :  { %797 = vmatmul.mubr.bf16.gmra.mrb[4].mxu0 %v2178_v39  ;;  %1089 = vperm.xlu0 %2134, %v64_v26   ;;  %v2241_v39 = vld [vmem:[#allocation2 + $0xa4] ss:$24 sps:$4 sm:$0xff]  }
  0x52   :  { %894 = vmatmul.mubr.bf16.gmra.mrb[4].mxu1 %v2179_v40  ;;  %804 = vmatprep.mubr.bf16.mxu0 %v2180_v41  ;;  %v2243_v40 = vld [vmem:[#allocation2 + $0xa0] ss:$24 sps:$4 sm:$0xff]   ;;  %v2244_v41 = vld [vmem:[#allocation2 + $0xd4] ss:$24 sps:$4 sm:$0xff]  }
  0x53   :  { %901 = vmatprep.mubr.bf16.mxu1 %v2182_v42  ;;  %1905 = vmatpush3.bf16.msra.mxu0 %v2209_v53  ;;  %v2246_v42 = vld [vmem:[#allocation2 + $0xd0] ss:$24 sps:$4 sm:$0xff]  }
  0x54   :  { %1906 = vmatprep.subr.bf16.mxu0 %v2210_v54  ;;  %1094 = vperm.xlu1 %2135, %v65_v28  }
  0x55   :  { %1099 = vperm.xlu0 %2134, %v66_v30  }
  0x57   :  { %1907 = vmatpush3.bf16.msra.mxu0 %v2211_v58 }
  0x58   :  { %1908 = vmatprep.subr.bf16.mxu0 %v2218_v59  ;;  %1104 = vperm.xlu1 %2135, %v67_v31  }
  0x59   :  { %805 = vmatmul.mubr.bf16.gmra.mrb[8].mxu0 %v2184_v43  ;;  %1109 = vperm.xlu0 %2134, %v68_v32   ;;  %v2247_v43 = vld [vmem:[#allocation2 + $0x104] ss:$24 sps:$4 sm:$0xff]  }
  0x5a   :  { %902 = vmatmul.mubr.bf16.gmra.mrb[8].mxu1 %v2185_v45  ;;  %812 = vmatprep.mubr.bf16.mxu0 %v2186_v46  ;;  %v2250_v45 = vld [vmem:[#allocation2 + $0x134] ss:$24 sps:$4 sm:$0xff]   ;;  %v2252_v46 = vld [vmem:[#allocation2 + $0x130] ss:$24 sps:$4 sm:$0xff]  }
  0x5b   :  { %909 = vmatprep.mubr.bf16.mxu1 %v2188_v49  ;;  %1909 = vmatpush3.bf16.msra.mxu0 %v2219_v61 }
  0x5c   :  { %1910 = vmatprep.subr.bf16.mxu0 %v2220_v62  ;;  %1114 = vperm.xlu1 %2135, %v69_v34   ;;  %v2463_v62 = vld [vmem:[%s2718_s0] sm:$0xff] }
  0x5d   :  { %1119 = vperm.xlu0 %2134, %v70_v36  }
  0x5f   :  { %1911 = vmatpush3.bf16.msra.mxu0 %v2221_v2 }
  0x60   :  { %1912 = vmatprep.subr.bf16.mxu0 %v2228_v3  ;;  %1124 = vperm.xlu1 %2135, %v71_v37  }
  0x61   :  { %813 = vmatmul.mubr.bf16.gmra.mrb[12].mxu0 %v2190_v52 }
  0x62   :  { %910 = vmatmul.mubr.bf16.gmra.mrb[12].mxu1 %v2191_v55  ;;  %820 = vmatprep.mubr.bf16.mxu0 %v2192_v56 }
  0x63   :  { %917 = vmatprep.mubr.bf16.mxu1 %v2194_v57  ;;  %1913 = vmatpush3.bf16.msra.mxu0 %v2229_v4 }
  0x64   :  { %1914 = vmatprep.subr.bf16.mxu0 %v2230_v6 }
  0x67   :  { %1915 = vmatpush3.bf16.msra.mxu0 %v2231_v10 }
  0x69   :  { %821 = vmatmul.mubr.bf16.gmra.mrb[16].mxu0 %v2196_v60 }
  0x6a   :  { %918 = vmatmul.mubr.bf16.gmra.mrb[16].mxu1 %v2197_v63  ;;  %828 = vmatprep.mubr.bf16.mxu0 %v2202_v0  ;;  %v76_v63 = vunpack.c.l.s8.bf16 %v2463_v62 }
  0x6b   :  { %925 = vmatprep.mubr.bf16.mxu1 %v2204_v1 }
  0x71   :  { %829 = vmatmul.mubr.bf16.gmra.mrb[20].mxu0 %v2206_v5 }
  0x72   :  { %926 = vmatmul.mubr.bf16.gmra.mrb[20].mxu1 %v2207_v7  ;;  %836 = vmatprep.mubr.bf16.mxu0 %v2212_v8 }
  0x73   :  { %933 = vmatprep.mubr.bf16.mxu1 %v2214_v9 }
  0x79   :  { %837 = vmatmul.mubr.bf16.gmra.mrb[24].mxu0 %v2216_v11 }
  0x7a   :  { %934 = vmatmul.mubr.bf16.gmra.mrb[24].mxu1 %v2217_v14  ;;  %844 = vmatprep.mubr.bf16.mxu0 %v2222_v15 }
  0x7b   :  { %941 = vmatprep.mubr.bf16.mxu1 %v2224_v16 }
  0x81   :  { %845 = vmatmul.mubr.bf16.gmra.mrb[28].mxu0 %v2226_v20 }
  0x82   :  { %942 = vmatmul.mubr.bf16.gmra.mrb[28].mxu1 %v2227_v22  ;;  %982 = vmatprep.mubr.bf16.mxu0 %v2234_v23 }
  0x83   :  { %2028 = vmatprep.mubr.bf16.mxu1 %v76_v63 }
  0x89   :  { %983 = vmatmul.mubr.bf16.vlgmr.msra.gmra.mrb[32].mxu0 %v2232_v27 }
  0x8a   :  { %990 = vmatprep.mubr.bf16.mxu0 %v2235_v29 }
  0x91   :  { %991 = vmatmul.mubr.bf16.gmra.mrb[36].mxu0 %v2237_v33 }
  0x92   :  { %998 = vmatprep.mubr.bf16.mxu0 %v2238_v35 }
  0x99   :  { %999 = vmatmul.mubr.bf16.gmra.mrb[40].mxu0 %v2240_v38 }
  0x9a   :  { %1006 = vmatprep.mubr.bf16.mxu0 %v2241_v39 }
  0xa1   :  { %1007 = vmatmul.mubr.bf16.gmra.mrb[44].mxu0 %v2243_v40 }
  0xa2   :  { %1014 = vmatprep.mubr.bf16.mxu0 %v2244_v41 }
  0xa9   :  { %1015 = vmatmul.mubr.bf16.gmra.mrb[48].mxu0 %v2246_v42 }
  0xaa   :  { %1022 = vmatprep.mubr.bf16.mxu0 %v2247_v43 }
  0xb1   :  { %1023 = vmatmul.mubr.bf16.gmra.mrb[52].mxu0 %v2249_v44 }
  0xb2   :  { %1030 = vmatprep.mubr.bf16.mxu0 %v2250_v45 }
  0xb9   :  { %1031 = vmatmul.mubr.bf16.gmra.mrb[56].mxu0 %v2252_v46 }
  0xba   :  { %1038 = vmatprep.mubr.bf16.mxu0 %v2253_v47 }
  0xc1   :  { %1039 = vmatmul.mubr.bf16.gmra.mrb[60].mxu0 %v2255_v48 }
  0xc2   :  { %2092 = vmatprep.mubr.bf16.mxu0 %v76_v63 }
 0x11c   :  { %v1788_v49 = vpop.f32.mrb[0].mxu0 }
 0x11d   :  { %v1852_v50 = vpop.f32.mrb[0].mxu1  ;;  %v1789_v51 = vpop.f32.mrb[1].mxu0 }
 0x11e   :  { %v1790_v52 = vadd.f32 %v1789_v51, %v1788_v49  ;;  %v1853_v53 = vpop.f32.mrb[1].mxu1  ;;  %v1791_v54 = vpop.f32.mrb[2].mxu0 }
 0x11f   :  { %v1854_v55 = vadd.f32 %v1853_v53, %v1852_v50  ;;  %v1855_v56 = vpop.f32.mrb[2].mxu1  ;;  %v1792_v57 = vpop.f32.mrb[3].mxu0 }
 0x120   :  { %v1793_v58 = vadd.f32 %v1792_v57, %v1791_v54  ;;  %v1856_v59 = vpop.f32.mrb[3].mxu1 }
 0x121   :  { %v2458_v60 = vadd.f32 %v1854_v55, %v1790_v52  ;;  %v1857_v61 = vadd.f32 %v1856_v59, %v1855_v56 }
 0x123   :  { %v2466_v0 = vadd.f32 %v1857_v61, %v1793_v58 }
 0x124   :  { %v1794_v1 = vpop.f32.mrb[4].mxu0 }
 0x125   :  { %v1858_v2 = vpop.f32.mrb[4].mxu1  ;;  %v1795_v3 = vpop.f32.mrb[5].mxu0 }
 0x126   :  { %v1796_v4 = vadd.f32 %v1795_v3, %v1794_v1  ;;  %v1859_v5 = vpop.f32.mrb[5].mxu1  ;;  %v1797_v6 = vpop.f32.mrb[6].mxu0 }
 0x127   :  { %v1860_v7 = vadd.f32 %v1859_v5, %v1858_v2  ;;  %v1861_v8 = vpop.f32.mrb[6].mxu1  ;;  %v1798_v9 = vpop.f32.mrb[7].mxu0 }
 0x128   :  { %v1799_v10 = vadd.f32 %v1798_v9, %v1797_v6  ;;  %v1862_v11 = vpop.f32.mrb[7].mxu1 }
 0x129   :  { %v2468_v12 = vadd.f32 %v1860_v7, %v1796_v4  ;;  %v1863_v13 = vadd.f32 %v1862_v11, %v1861_v8 }
 0x12b   :  { %v2470_v14 = vadd.f32 %v1863_v13, %v1799_v10 }
 0x12c   :  { %v1800_v15 = vpop.f32.mrb[8].mxu0 }
 0x12d   :  { %v1864_v16 = vpop.f32.mrb[8].mxu1  ;;  %v1801_v17 = vpop.f32.mrb[9].mxu0 }
 0x12e   :  { %v1802_v18 = vadd.f32 %v1801_v17, %v1800_v15  ;;  %v1865_v19 = vpop.f32.mrb[9].mxu1  ;;  %v1803_v20 = vpop.f32.mrb[10].mxu0 }
 0x12f   :  { %v1866_v21 = vadd.f32 %v1865_v19, %v1864_v16  ;;  %v1867_v22 = vpop.f32.mrb[10].mxu1  ;;  %v1804_v23 = vpop.f32.mrb[11].mxu0 }
 0x130   :  { %v1805_v24 = vadd.f32 %v1804_v23, %v1803_v20  ;;  %v1868_v25 = vpop.f32.mrb[11].mxu1 }
 0x131   :  { %v2472_v26 = vadd.f32 %v1866_v21, %v1802_v18  ;;  %v1869_v27 = vadd.f32 %v1868_v25, %v1867_v22 }
 0x133   :  { %v2474_v28 = vadd.f32 %v1869_v27, %v1805_v24 }
 0x134   :  { %v1806_v29 = vpop.f32.mrb[12].mxu0 }
 0x135   :  { %v1870_v30 = vpop.f32.mrb[12].mxu1  ;;  %v1807_v31 = vpop.f32.mrb[13].mxu0 }
 0x136   :  { %v1808_v32 = vadd.f32 %v1807_v31, %v1806_v29  ;;  %v1871_v33 = vpop.f32.mrb[13].mxu1  ;;  %v1809_v34 = vpop.f32.mrb[14].mxu0 }
 0x137   :  { %v1872_v35 = vadd.f32 %v1871_v33, %v1870_v30  ;;  %v1873_v36 = vpop.f32.mrb[14].mxu1  ;;  %v1810_v37 = vpop.f32.mrb[15].mxu0 }
 0x138   :  { %v1811_v38 = vadd.f32 %v1810_v37, %v1809_v34  ;;  %v1874_v39 = vpop.f32.mrb[15].mxu1 }
 0x139   :  { %v2476_v40 = vadd.f32 %v1872_v35, %v1808_v32  ;;  %v1875_v41 = vadd.f32 %v1874_v39, %v1873_v36 }
 0x13b   :  { %v2478_v42 = vadd.f32 %v1875_v41, %v1811_v38 }
 0x13c   :  { %v1812_v43 = vpop.f32.mrb[16].mxu0 }
 0x13d   :  { %v1876_v44 = vpop.f32.mrb[16].mxu1  ;;  %v1813_v45 = vpop.f32.mrb[17].mxu0 }
 0x13e   :  { %v1814_v46 = vadd.f32 %v1813_v45, %v1812_v43  ;;  %v1877_v47 = vpop.f32.mrb[17].mxu1  ;;  %v1815_v48 = vpop.f32.mrb[18].mxu0 }
 0x13f   :  { %v1878_v49 = vadd.f32 %v1877_v47, %v1876_v44  ;;  %v1879_v50 = vpop.f32.mrb[18].mxu1  ;;  %v1816_v51 = vpop.f32.mrb[19].mxu0 }
 0x140   :  { %v1817_v52 = vadd.f32 %v1816_v51, %v1815_v48  ;;  %v1880_v53 = vpop.f32.mrb[19].mxu1  ;;  %v2496_v44 = vpop.permute.xlu0 %1049 }
 0x141   :  { %v2480_v54 = vadd.f32 %v1878_v49, %v1814_v46  ;;  %v1881_v55 = vadd.f32 %v1880_v53, %v1879_v50 }
 0x143   :  { %v2482_v56 = vadd.f32 %v1881_v55, %v1817_v52 }
 0x144   :  { %v1818_v57 = vpop.f32.mrb[20].mxu0  ;;  %v2499_v52 = vpop.permute.xlu0 %1054 }
 0x145   :  { %v1882_v58 = vpop.f32.mrb[20].mxu1  ;;  %v1819_v59 = vpop.f32.mrb[21].mxu0 }
 0x146   :  { %v1820_v61 = vadd.f32 %v1819_v59, %v1818_v57  ;;  %v1883_v63 = vpop.f32.mrb[21].mxu1  ;;  %v1821_v1 = vpop.f32.mrb[22].mxu0 }
 0x147   :  { %v1884_v2 = vadd.f32 %v1883_v63, %v1882_v58  ;;  %v1885_v3 = vpop.f32.mrb[22].mxu1  ;;  %v1822_v4 = vpop.f32.mrb[23].mxu0 }
 0x148   :  { %v1823_v5 = vadd.f32 %v1822_v4, %v1821_v1  ;;  %v1886_v6 = vpop.f32.mrb[23].mxu1  ;;  %v2504_v59 = vpop.permute.xlu1 %1059 }
 0x149   :  { %v2484_v7 = vadd.f32 %v1884_v2, %v1820_v61  ;;  %v1887_v8 = vadd.f32 %v1886_v6, %v1885_v3 }
 0x14b   :  { %v2486_v9 = vadd.f32 %v1887_v8, %v1823_v5 }
 0x14c   :  { %v1824_v10 = vpop.f32.mrb[24].mxu0 }
 0x14d   :  { %v1888_v11 = vpop.f32.mrb[24].mxu1  ;;  %v1825_v13 = vpop.f32.mrb[25].mxu0 }
 0x14e   :  { %v1826_v15 = vadd.f32 %v1825_v13, %v1824_v10  ;;  %v1889_v16 = vpop.f32.mrb[25].mxu1  ;;  %v1827_v17 = vpop.f32.mrb[26].mxu0 }
 0x14f   :  { %v1890_v18 = vadd.f32 %v1889_v16, %v1888_v11  ;;  %v1891_v19 = vpop.f32.mrb[26].mxu1  ;;  %v1828_v20 = vpop.f32.mrb[27].mxu0 }
 0x150   :  { %v1829_v21 = vadd.f32 %v1828_v20, %v1827_v17  ;;  %v1892_v22 = vpop.f32.mrb[27].mxu1 }
 0x151   :  { %v2488_v23 = vadd.f32 %v1890_v18, %v1826_v15  ;;  %v1893_v24 = vadd.f32 %v1892_v22, %v1891_v19 }
 0x153   :  { %v2490_v25 = vadd.f32 %v1893_v24, %v1829_v21 }
 0x154   :  { %v1830_v27 = vpop.f32.mrb[28].mxu0 }
 0x155   :  { %v1894_v29 = vpop.f32.mrb[28].mxu1  ;;  %v1831_v30 = vpop.f32.mrb[29].mxu0 }
 0x156   :  { %v1832_v31 = vadd.f32 %v1831_v30, %v1830_v27  ;;  %v1895_v32 = vpop.f32.mrb[29].mxu1  ;;  %v1833_v33 = vpop.f32.mrb[30].mxu0 }
 0x157   :  { %v1896_v34 = vadd.f32 %v1895_v32, %v1894_v29  ;;  %v1897_v35 = vpop.f32.mrb[30].mxu1  ;;  %v1834_v36 = vpop.f32.mrb[31].mxu0 }
 0x158   :  { %v1835_v37 = vadd.f32 %v1834_v36, %v1833_v33  ;;  %v1898_v38 = vpop.f32.mrb[31].mxu1 }
 0x159   :  { %v2492_v39 = vadd.f32 %v1896_v34, %v1832_v31  ;;  %v1899_v41 = vadd.f32 %v1898_v38, %v1897_v35 }
 0x15b   :  { %v2494_v43 = vadd.f32 %v1899_v41, %v1835_v37 }
 0x15c   :  { %v1916_v45 = vpop.f32.mrb[32].mxu0 }
 0x15d   :  { %v1917_v46 = vpop.f32.mrb[33].mxu0 }
 0x15e   :  { %v1918_v47 = vadd.f32 %v1917_v46, %v1916_v45  ;;  %v1919_v48 = vpop.f32.mrb[34].mxu0 }
 0x15f   :  { %v1920_v49 = vpop.f32.mrb[35].mxu0 }
 0x160   :  { %v985_v50 = vadd.f32 %v1918_v47, %v2458_v60  ;;  %v1921_v51 = vadd.f32 %v1920_v49, %v1919_v48 }
 0x162   :  { %v988_v53 = vadd.f32 %v1921_v51, %v2466_v0  ;;  %v1127_v55 = vmul.f32 %v2496_v44, %v985_v50  ;;  %v2508_v0 = vpop.permute.xlu1 %1064 }
 0x164   :  { %v1128_v57 = vmul.f32 %v2499_v52, %v988_v53  ;;  %v1922_v58 = vpop.f32.mrb[36].mxu0 }
 0x165   :  { %v1923_v61 = vpop.f32.mrb[37].mxu0 }
 0x166   :  { %v1924_v63 = vadd.f32 %v1923_v61, %v1922_v58  ;;  %v1925_v1 = vpop.f32.mrb[38].mxu0  ;;  %v1143_v2 = vpack.c.bf16 %v1128_v57, %v1127_v55  ;;  %v2516_v20 = vpop.permute.xlu1 %1074 }
 0x167   :  { %v1926_v3 = vpop.f32.mrb[39].mxu0 }
 0x168   :  { %v993_v4 = vadd.f32 %v1924_v63, %v2468_v12  ;;  %v1927_v60 = vadd.f32 %v1926_v3, %v1925_v1  ;;  %2012 = vmatprep.subr.bf16.mxu1 %v1143_v2 }
 0x169   :  { %2013 = vmatpush3.bf16.msra.mxu1 %v1143_v2 }
 0x16a   :  { %v996_v5 = vadd.f32 %v1927_v60, %v2470_v14  ;;  %v1129_v6 = vmul.f32 %v2504_v59, %v993_v4  ;;  %v2514_v14 = vpop.permute.xlu0 %1069  ;;  %v2524_v35 = vpop.permute.xlu1 %1084 }
 0x16c   :  { %v1130_v8 = vmul.f32 %v2508_v0, %v996_v5  ;;  %v1928_v10 = vpop.f32.mrb[40].mxu0 }
 0x16d   :  { %v1929_v11 = vpop.f32.mrb[41].mxu0 }
 0x16e   :  { %v1930_v13 = vadd.f32 %v1929_v11, %v1928_v10  ;;  %v1931_v15 = vpop.f32.mrb[42].mxu0  ;;  %v1144_v16 = vpack.c.bf16 %v1130_v8, %v1129_v6  ;;  %v2522_v34 = vpop.permute.xlu0 %1079 }
 0x16f   :  { %v1932_v17 = vpop.f32.mrb[43].mxu0  ;;  %v2532_v51 = vpop.permute.xlu1 %1094 }
 0x170   :  { %v1001_v18 = vadd.f32 %v1930_v13, %v2472_v26  ;;  %v1933_v12 = vadd.f32 %v1932_v17, %v1931_v15  ;;  %2014 = vmatprep.subr.bf16.mxu1 %v1144_v16 }
 0x171   :  { %2015 = vmatpush3.bf16.msra.mxu1 %v1144_v16 }
 0x172   :  { %v1004_v19 = vadd.f32 %v1933_v12, %v2474_v28  ;;  %v1131_v21 = vmul.f32 %v2514_v14, %v1001_v18  ;;  %v2530_v50 = vpop.permute.xlu0 %1089 }
 0x173   :  { %v2540_v60 = vpop.permute.xlu1 %1104 }
 0x174   :  { %v1132_v22 = vmul.f32 %v2516_v20, %v1004_v19  ;;  %v1934_v24 = vpop.f32.mrb[44].mxu0 }
 0x175   :  { %v1935_v27 = vpop.f32.mrb[45].mxu0 }
 0x176   :  { %v1936_v29 = vadd.f32 %v1935_v27, %v1934_v24  ;;  %v1937_v30 = vpop.f32.mrb[46].mxu0  ;;  %v1145_v31 = vpack.c.bf16 %v1132_v22, %v1131_v21  ;;  %v2538_v4 = vpop.permute.xlu0 %1099 }
 0x177   :  { %v1938_v32 = vpop.f32.mrb[47].mxu0  ;;  %v2548_v12 = vpop.permute.xlu1 %1114 }
 0x178   :  { %v1009_v26 = vadd.f32 %v1936_v29, %v2476_v40  ;;  %v1939_v33 = vadd.f32 %v1938_v32, %v1937_v30  ;;  %2016 = vmatprep.subr.bf16.mxu1 %v1145_v31 }
 0x179   :  { %2017 = vmatpush3.bf16.msra.mxu1 %v1145_v31 }
 0x17a   :  { %v1012_v28 = vadd.f32 %v1939_v33, %v2478_v42  ;;  %v1133_v36 = vmul.f32 %v2522_v34, %v1009_v26  ;;  %v2546_v18 = vpop.permute.xlu0 %1109 }
 0x17b   :  { %v2556_v33 = vpop.permute.xlu1 %1124 }
 0x17c   :  { %v1134_v37 = vmul.f32 %v2524_v35, %v1012_v28  ;;  %v1940_v38 = vpop.f32.mrb[48].mxu0 }
 0x17d   :  { %v1941_v41 = vpop.f32.mrb[49].mxu0 }
 0x17e   :  { %v1942_v45 = vadd.f32 %v1941_v41, %v1940_v38  ;;  %v1943_v46 = vpop.f32.mrb[50].mxu0  ;;  %v1146_v47 = vpack.c.bf16 %v1134_v37, %v1133_v36  ;;  %v2554_v26 = vpop.permute.xlu0 %1119  ;;  %v2563_v38 = vld [vmem:[%s2718_s0 + $0x8] sm:$0xff] }
 0x17f   :  { %v1944_v48 = vpop.f32.mrb[51].mxu0  ;;  %v78_v41 = vunpack.c.l.s8.bf16 %v2563_v38 }
 0x180   :  { %v1017_v40 = vadd.f32 %v1942_v45, %v2480_v54  ;;  %v1945_v49 = vadd.f32 %v1944_v48, %v1943_v46  ;;  %2018 = vmatprep.subr.bf16.mxu1 %v1146_v47  ;;  %v2257_v45 = vld [vmem:[%s2723_s5 + $0x8] sm:$0xff]   ;;  %v2580_v46 = vld [vmem:[%s2718_s0 + $0x10] sm:$0xff]  ;;  %v79_v48 = vunpack.c.h.s8.bf16 %v2563_v38 }
 0x181   :  { %2019 = vmatpush3.bf16.msra.mxu1 %v1146_v47  ;;  %v2258_v47 = vld [vmem:[%s2723_s5 + $0x10] sm:$0xff]  }
 0x182   :  { %v1020_v42 = vadd.f32 %v1945_v49, %v2482_v56  ;;  %v1135_v53 = vmul.f32 %v2530_v50, %v1017_v40  ;;  %v80_v40 = vunpack.c.l.s8.bf16 %v2580_v46  ;;  %v2259_v49 = vld [vmem:[%s2723_s5 + $0x18] sm:$0xff]  }
 0x184   :  { %v1136_v55 = vmul.f32 %v2532_v51, %v1020_v42  ;;  %v1946_v57 = vpop.f32.mrb[52].mxu0  ;;  %v2597_v42 = vld [vmem:[%s2718_s0 + $0x18] sm:$0xff] }
 0x185   :  { %v1947_v58 = vpop.f32.mrb[53].mxu0 }
 0x186   :  { %v1948_v61 = vadd.f32 %v1947_v58, %v1946_v57  ;;  %v1949_v63 = vpop.f32.mrb[54].mxu0  ;;  %v1147_v1 = vpack.c.bf16 %v1136_v55, %v1135_v53  ;;  %v2260_v53 = vld [vmem:[%s2723_s5 + $0x20] sm:$0xff]   ;;  %v81_v55 = vunpack.c.h.s8.bf16 %v2580_v46  ;;  %v82_v57 = vunpack.c.l.s8.bf16 %v2597_v42 }
 0x187   :  { %v1950_v2 = vpop.f32.mrb[55].mxu0  ;;  %v83_v58 = vunpack.c.h.s8.bf16 %v2597_v42 }
 0x188   :  { %v1025_v54 = vadd.f32 %v1948_v61, %v2484_v7  ;;  %v1951_v3 = vadd.f32 %v1950_v2, %v1949_v63  ;;  %2020 = vmatprep.subr.bf16.mxu1 %v1147_v1  ;;  %v2261_v61 = vld [vmem:[%s2723_s5 + $0x28] sm:$0xff]   ;;  %v2262_v63 = vld [vmem:[%s2723_s5 + $0x30] sm:$0xff]  }
 0x189   :  { %2021 = vmatpush3.bf16.msra.mxu1 %v1147_v1  ;;  %v2263_v1 = vld [vmem:[%s2723_s5 + $0x38] sm:$0xff]  }
 0x18a   :  { %v1028_v56 = vadd.f32 %v1951_v3, %v2486_v9  ;;  %v1137_v5 = vmul.f32 %v2538_v4, %v1025_v54  ;;  %v2623_v54 = vld [vmem:[%s2722_s4] ss:$0 sm:$0xff] }
 0x18c   :  { %v1138_v6 = vmul.f32 %v2540_v60, %v1028_v56  ;;  %v1952_v8 = vpop.f32.mrb[56].mxu0 }
 0x18d   :  { %v1953_v10 = vpop.f32.mrb[57].mxu0 }
 0x18e   :  { %v1954_v11 = vadd.f32 %v1953_v10, %v1952_v8  ;;  %v1955_v13 = vpop.f32.mrb[58].mxu0  ;;  %v1148_v15 = vpack.c.bf16 %v1138_v6, %v1137_v5 }
 0x18f   :  { %v1956_v16 = vpop.f32.mrb[59].mxu0 }
 0x190   :  { %v1033_v7 = vadd.f32 %v1954_v11, %v2488_v23  ;;  %v1957_v17 = vadd.f32 %v1956_v16, %v1955_v13  ;;  %2022 = vmatprep.subr.bf16.mxu1 %v1148_v15 }
 0x191   :  { %2023 = vmatpush3.bf16.msra.mxu1 %v1148_v15 }
 0x192   :  { %v1036_v9 = vadd.f32 %v1957_v17, %v2490_v25  ;;  %v1139_v19 = vmul.f32 %v2546_v18, %v1033_v7 }
 0x194   :  { %v1140_v21 = vmul.f32 %v2548_v12, %v1036_v9  ;;  %v1958_v22 = vpop.f32.mrb[60].mxu0 }
 0x195   :  { %v1959_v24 = vpop.f32.mrb[61].mxu0 }
 0x196   :  { %v1960_v27 = vadd.f32 %v1959_v24, %v1958_v22  ;;  %v1961_v29 = vpop.f32.mrb[62].mxu0  ;;  %v1149_v30 = vpack.c.bf16 %v1140_v21, %v1139_v19 }
 0x197   :  { %v1962_v31 = vpop.f32.mrb[63].mxu0 }
 0x198   :  { %v1041_v23 = vadd.f32 %v1960_v27, %v2492_v39  ;;  %v1963_v32 = vadd.f32 %v1962_v31, %v1961_v29  ;;  %2024 = vmatprep.subr.bf16.mxu1 %v1149_v30  ;;  %v2256_v39 = vld [vmem:[%s2723_s5] sm:$0xff]  }
 0x199   :  { %2025 = vmatpush3.bf16.msra.mxu1 %v1149_v30 }
 0x19a   :  { %v1044_v25 = vadd.f32 %v1963_v32, %v2494_v43  ;;  %v1141_v28 = vmul.f32 %v2554_v26, %v1041_v23  ;;  %v77_v43 = vunpack.c.h.s8.bf16 %v2463_v62  ;;  %v1771_v62 = vld [vmem:[%s2724_s6] ss:$0 sm:$0xff]  ;;  %s2343_s6 = smov [#allocation7]  }
 0x19b   :  { %s1653_s10 = sshll.u32 %s2343_s6, 4  ;;  %s1654_s10 = int_to_ptr.vmem [resolvable:$true] %s1653_s10 }
 0x19c   :  { %v1142_v36 = vmul.f32 %v2556_v33, %v1044_v25  ;;  %s2308_s2 = scalar_lea.vmem %s1654_s10, 2048  ;;  %p2313_p3 = scmp.lt.s32.totalorder %s1654_s10, %s1654_s10 }
 0x19d   :  { %p2309_p2 = scmp.ne.s32.totalorder %s1654_s10, %s2308_s2  ;;  %p2314_p4 = scmp.lt.s32.totalorder %s2308_s2, %s2308_s2 }
 0x19e   :  { %v1150_v37 = vpack.c.bf16 %v1142_v36, %v1141_v28 }
 0x19f   :  { %p2315_p5 = por %p2314_p4, %p2313_p3 }
 0x1a0   :  { %2026 = vmatprep.subr.bf16.mxu1 %v1150_v37 }
 0x1a1   :  { %2027 = vmatpush3.bf16.msra.mxu1 %v1150_v37  ;;  %p2316_p6 = pnand %p2315_p5, %p2309_p2 }
 0x1a2   :  { %2044 = vmatprep.subr.bf16.mxu1 %v2256_v39 }
 0x1a4   :  { %2029 = vmatmul.mubr.bf16.vlgmr.msra.gmra.mrb[32].mxu1 %v77_v43 }
 0x1a5   :  { %2032 = vmatprep.mubr.bf16.mxu1 %v78_v41  ;;  %2045 = vmatpush3.bf16.msra.mxu1 %v2256_v39 }
 0x1a6   :  { %2046 = vmatprep.subr.bf16.mxu1 %v2257_v45 }
 0x1a9   :  { %2047 = vmatpush3.bf16.msra.mxu1 %v2257_v45 }
 0x1aa   :  { %2048 = vmatprep.subr.bf16.mxu1 %v2258_v47 }
 0x1ac   :  { %2033 = vmatmul.mubr.bf16.gmra.mrb[36].mxu1 %v79_v48 }
 0x1ad   :  { %2036 = vmatprep.mubr.bf16.mxu1 %v80_v40  ;;  %2049 = vmatpush3.bf16.msra.mxu1 %v2258_v47 }
 0x1ae   :  { %2050 = vmatprep.subr.bf16.mxu1 %v2259_v49 }
 0x1b1   :  { %2051 = vmatpush3.bf16.msra.mxu1 %v2259_v49 }
 0x1b2   :  { %2052 = vmatprep.subr.bf16.mxu1 %v2260_v53 }
 0x1b4   :  { %2037 = vmatmul.mubr.bf16.gmra.mrb[40].mxu1 %v81_v55 }
 0x1b5   :  { %2040 = vmatprep.mubr.bf16.mxu1 %v82_v57  ;;  %2053 = vmatpush3.bf16.msra.mxu1 %v2260_v53 }
 0x1b6   :  { %2054 = vmatprep.subr.bf16.mxu1 %v2261_v61 }
 0x1b9   :  { %2055 = vmatpush3.bf16.msra.mxu1 %v2261_v61 }
 0x1ba   :  { %2056 = vmatprep.subr.bf16.mxu1 %v2262_v63 }
 0x1bc   :  { %2041 = vmatmul.mubr.bf16.gmra.mrb[44].mxu1 %v83_v58 }
 0x1bd   :  { %2057 = vmatpush3.bf16.msra.mxu1 %v2262_v63 }
 0x1be   :  { %2058 = vmatprep.subr.bf16.mxu1 %v2263_v1 }
 0x1c1   :  { %2059 = vmatpush3.bf16.msra.mxu1 %v2263_v1 }
 0x277   :  { %v2030_v2 = vpop.f32.mrb[32].mxu1 }
 0x278   :  { %v1250_v3 = vmul.f32 %v2030_v2, %v2504_v59  ;;  %v1185_v56 = vpop.f32.mrb[33].mxu1 }
 0x279   :  { %v1248_v5 = vmul.f32 %v1185_v56, %v2496_v44  ;;  %v2031_v6 = vpop.f32.mrb[34].mxu1 }
 0x27a   :  { %v1273_v8 = vadd.f32 %v2623_v54, %v1250_v3  ;;  %v1251_v10 = vmul.f32 %v2031_v6, %v2508_v0  ;;  %v1188_v11 = vpop.f32.mrb[35].mxu1 }
 0x27b   :  { %v1271_v13 = vadd.f32 %v2623_v54, %v1248_v5  ;;  %v1249_v15 = vmul.f32 %v1188_v11, %v2499_v52 }
 0x27c   :  { %v1274_v16 = vadd.f32 %v2623_v54, %v1251_v10  ;;  %v1289_v17 = vmax.f32 %v1273_v8, 0.0 }
 0x27d   :  { %v1272_v7 = vadd.f32 %v2623_v54, %v1249_v15  ;;  %v1287_v19 = vmax.f32 %v1271_v13, 0.0 }
 0x27e   :  { %v1290_v9 = vmax.f32 %v1274_v16, 0.0 }
 0x27f   :  { %v1288_v21 = vmax.f32 %v1272_v7, 0.0  ;;  %v2034_v22 = vpop.f32.mrb[36].mxu1 }
 0x280   :  { %v1304_v24 = vpack.c.bf16 %v1290_v9, %v1289_v17  ;;  %v1254_v27 = vmul.f32 %v2034_v22, %v2522_v34  ;;  %v1201_v29 = vpop.f32.mrb[37].mxu1 }
 0x281   :  { %v1252_v30 = vmul.f32 %v1201_v29, %v2514_v14  ;;  %v2035_v31 = vpop.f32.mrb[38].mxu1  ;;  %v1303_v23 = vpack.c.bf16 %v1288_v21, %v1287_v19 }
 0x282   :  { %v1277_v32 = vadd.f32 %v2623_v54, %v1254_v27  ;;  %v1255_v25 = vmul.f32 %v2035_v31, %v2524_v35  ;;  %v1204_v28 = vpop.f32.mrb[39].mxu1 }
 0x283   :  { %v1275_v36 = vadd.f32 %v2623_v54, %v1252_v30  ;;  %v1253_v37 = vmul.f32 %v1204_v28, %v2516_v20  ;;  %2060 = vmatprep.mubr.bf16.mxu1 %v1303_v23 }
 0x284   :  { %v1278_v39 = vadd.f32 %v2623_v54, %v1255_v25  ;;  %2061 = vmatmul.mubr.bf16.vlgmr.msra.gmra.mrb[48].mxu1 %v1304_v24  ;;  %v1293_v47 = vmax.f32 %v1277_v32, 0.0 }
 0x285   :  { %v1276_v45 = vadd.f32 %v2623_v54, %v1253_v37  ;;  %v1291_v53 = vmax.f32 %v1275_v36, 0.0 }
 0x286   :  { %v1294_v49 = vmax.f32 %v1278_v39, 0.0 }
 0x287   :  { %v1292_v61 = vmax.f32 %v1276_v45, 0.0  ;;  %v2038_v63 = vpop.f32.mrb[40].mxu1 }
 0x288   :  { %v1258_v1 = vmul.f32 %v2038_v63, %v2538_v4  ;;  %v1217_v2 = vpop.f32.mrb[41].mxu1  ;;  %v1306_v3 = vpack.c.bf16 %v1294_v49, %v1293_v47 }
 0x289   :  { %v1256_v56 = vmul.f32 %v1217_v2, %v2530_v50  ;;  %v2039_v5 = vpop.f32.mrb[42].mxu1  ;;  %v1305_v6 = vpack.c.bf16 %v1292_v61, %v1291_v53 }
 0x28a   :  { %v1281_v8 = vadd.f32 %v2623_v54, %v1258_v1  ;;  %v1259_v10 = vmul.f32 %v2039_v5, %v2540_v60  ;;  %v1220_v11 = vpop.f32.mrb[43].mxu1 }
 0x28b   :  { %v1279_v13 = vadd.f32 %v2623_v54, %v1256_v56  ;;  %v1257_v15 = vmul.f32 %v1220_v11, %v2532_v51  ;;  %2064 = vmatprep.mubr.bf16.mxu1 %v1305_v6 }
 0x28c   :  { %v1282_v16 = vadd.f32 %v2623_v54, %v1259_v10  ;;  %2065 = vmatmul.mubr.bf16.gmra.mrb[52].mxu1 %v1306_v3  ;;  %v1297_v17 = vmax.f32 %v1281_v8, 0.0 }
 0x28d   :  { %v1280_v7 = vadd.f32 %v2623_v54, %v1257_v15  ;;  %v1295_v19 = vmax.f32 %v1279_v13, 0.0 }
 0x28e   :  { %v1298_v9 = vmax.f32 %v1282_v16, 0.0 }
 0x28f   :  { %v1296_v21 = vmax.f32 %v1280_v7, 0.0  ;;  %v2042_v22 = vpop.f32.mrb[44].mxu1 }
 0x290   :  { %v1262_v24 = vmul.f32 %v2042_v22, %v2554_v26  ;;  %v1233_v27 = vpop.f32.mrb[45].mxu1  ;;  %v1308_v29 = vpack.c.bf16 %v1298_v9, %v1297_v17 }
 0x291   :  { %v1260_v30 = vmul.f32 %v1233_v27, %v2546_v18  ;;  %v2043_v31 = vpop.f32.mrb[46].mxu1  ;;  %v1307_v23 = vpack.c.bf16 %v1296_v21, %v1295_v19 }
 0x292   :  { %v1285_v32 = vadd.f32 %v2623_v54, %v1262_v24  ;;  %v1263_v25 = vmul.f32 %v2043_v31, %v2556_v33  ;;  %v1236_v28 = vpop.f32.mrb[47].mxu1 }
 0x293   :  { %v1283_v36 = vadd.f32 %v2623_v54, %v1260_v30  ;;  %v1261_v37 = vmul.f32 %v1236_v28, %v2548_v12  ;;  %2068 = vmatprep.mubr.bf16.mxu1 %v1307_v23 }
 0x294   :  { %v1286_v39 = vadd.f32 %v2623_v54, %v1263_v25  ;;  %2069 = vmatmul.mubr.bf16.gmra.mrb[56].mxu1 %v1308_v29  ;;  %v1301_v47 = vmax.f32 %v1285_v32, 0.0 }
 0x295   :  { %v1284_v45 = vadd.f32 %v2623_v54, %v1261_v37  ;;  %v1299_v53 = vmax.f32 %v1283_v36, 0.0 }
 0x296   :  { %v1302_v49 = vmax.f32 %v1286_v39, 0.0 }
 0x297   :  { %v1300_v61 = vmax.f32 %v1284_v45, 0.0 }
 0x298   :  { %v1310_v63 = vpack.c.bf16 %v1302_v49, %v1301_v47 }
 0x299   :  { %v1309_v1 = vpack.c.bf16 %v1300_v61, %v1299_v53 }
 0x29b   :  { %2072 = vmatprep.mubr.bf16.mxu1 %v1309_v1 }
 0x29c   :  { %2073 = vmatmul.mubr.bf16.gmra.mrb[60].mxu1 %v1310_v63 }
 0x29d   :  { %2100 = vmatprep.mubr.bf16.mxu1 %v80_v40 }
 0x357   :  { %v2062_v2 = vpop.f32.mrb[48].mxu1 }
 0x358   :  { %v1409_v3 = vpop.f32.mrb[49].mxu1  ;;  %v1474_v5 = vmul.f32 %v2062_v2, %v2504_v59 }
 0x359   :  { %v2063_v56 = vpop.f32.mrb[50].mxu1  ;;  %v1472_v54 = vmul.f32 %v1409_v3, %v2496_v44 }
 0x35a   :  { %v1475_v6 = vmul.f32 %v2063_v56, %v2508_v0  ;;  %v1412_v8 = vpop.f32.mrb[51].mxu1 }
 0x35b   :  { %v1473_v10 = vmul.f32 %v1412_v8, %v2499_v52 }
 0x35c   :  { %v1489_v11 = vpack.c.bf16 %v1475_v6, %v1474_v5 }
 0x35d   :  { %v1488_v13 = vpack.c.bf16 %v1473_v10, %v1472_v54 }
 0x35f   :  { %v2066_v15 = vpop.f32.mrb[52].mxu1  ;;  %2076 = vmatprep.subr.bf16.mxu0 %v1488_v13  ;;  %2108 = vmatprep.subr.bf16.mxu1 %v1488_v13 }
 0x360   :  { %v1425_v16 = vpop.f32.mrb[53].mxu1  ;;  %2077 = vmatpush3.bf16.msra.mxu0 %v1488_v13  ;;  %2116 = vmatpush3.bf16.msra.mxu1 %v1488_v13  ;;  %v1478_v7 = vmul.f32 %v2066_v15, %v2522_v34 }
 0x361   :  { %v2067_v40 = vpop.f32.mrb[54].mxu1  ;;  %2078 = vmatprep.subr.bf16.mxu0 %v1489_v11  ;;  %2109 = vmatprep.subr.bf16.mxu1 %v1489_v11  ;;  %v1476_v19 = vmul.f32 %v1425_v16, %v2514_v14 }
 0x362   :  { %v1479_v17 = vmul.f32 %v2067_v40, %v2524_v35  ;;  %v1428_v9 = vpop.f32.mrb[55].mxu1 }
 0x363   :  { %v1477_v21 = vmul.f32 %v1428_v9, %v2516_v20 }
 0x364   :  { %v1491_v22 = vpack.c.bf16 %v1479_v17, %v1478_v7  ;;  %2079 = vmatpush3.bf16.msra.mxu0 %v1489_v11  ;;  %2117 = vmatpush3.bf16.msra.mxu1 %v1489_v11 }
 0x365   :  { %v1490_v24 = vpack.c.bf16 %v1477_v21, %v1476_v19 }
 0x367   :  { %v2070_v27 = vpop.f32.mrb[56].mxu1  ;;  %2080 = vmatprep.subr.bf16.mxu0 %v1490_v24  ;;  %2110 = vmatprep.subr.bf16.mxu1 %v1490_v24 }
 0x368   :  { %v1441_v29 = vpop.f32.mrb[57].mxu1  ;;  %2081 = vmatpush3.bf16.msra.mxu0 %v1490_v24  ;;  %2118 = vmatpush3.bf16.msra.mxu1 %v1490_v24  ;;  %v1482_v31 = vmul.f32 %v2070_v27, %v2538_v4 }
 0x369   :  { %v2071_v30 = vpop.f32.mrb[58].mxu1  ;;  %2082 = vmatprep.subr.bf16.mxu0 %v1491_v22  ;;  %2111 = vmatprep.subr.bf16.mxu1 %v1491_v22  ;;  %v1480_v25 = vmul.f32 %v1441_v29, %v2530_v50 }
 0x36a   :  { %v1483_v23 = vmul.f32 %v2071_v30, %v2540_v60  ;;  %v1444_v32 = vpop.f32.mrb[59].mxu1 }
 0x36b   :  { %v1481_v28 = vmul.f32 %v1444_v32, %v2532_v51 }
 0x36c   :  { %v1493_v36 = vpack.c.bf16 %v1483_v23, %v1482_v31  ;;  %2083 = vmatpush3.bf16.msra.mxu0 %v1491_v22  ;;  %2119 = vmatpush3.bf16.msra.mxu1 %v1491_v22 }
 0x36d   :  { %v1492_v37 = vpack.c.bf16 %v1481_v28, %v1480_v25 }
 0x36f   :  { %v2074_v39 = vpop.f32.mrb[60].mxu1  ;;  %2084 = vmatprep.subr.bf16.mxu0 %v1492_v37  ;;  %2112 = vmatprep.subr.bf16.mxu1 %v1492_v37 }
 0x370   :  { %v1457_v45 = vpop.f32.mrb[61].mxu1  ;;  %2085 = vmatpush3.bf16.msra.mxu0 %v1492_v37  ;;  %2120 = vmatpush3.bf16.msra.mxu1 %v1492_v37  ;;  %v1486_v49 = vmul.f32 %v2074_v39, %v2554_v26 }
 0x371   :  { %v2075_v47 = vpop.f32.mrb[62].mxu1  ;;  %2086 = vmatprep.subr.bf16.mxu0 %v1493_v36  ;;  %2113 = vmatprep.subr.bf16.mxu1 %v1493_v36  ;;  %v1484_v63 = vmul.f32 %v1457_v45, %v2546_v18 }
 0x372   :  { %v1487_v53 = vmul.f32 %v2075_v47, %v2556_v33  ;;  %v1460_v61 = vpop.f32.mrb[63].mxu1 }
 0x373   :  { %v1485_v1 = vmul.f32 %v1460_v61, %v2548_v12 }
 0x374   :  { %v1495_v2 = vpack.c.bf16 %v1487_v53, %v1486_v49  ;;  %2087 = vmatpush3.bf16.msra.mxu0 %v1493_v36  ;;  %2121 = vmatpush3.bf16.msra.mxu1 %v1493_v36 }
 0x375   :  { %v1494_v3 = vpack.c.bf16 %v1485_v1, %v1484_v63 }
 0x377   :  { %2088 = vmatprep.subr.bf16.mxu0 %v1494_v3  ;;  %2114 = vmatprep.subr.bf16.mxu1 %v1494_v3 }
 0x378   :  { %2089 = vmatpush3.bf16.msra.mxu0 %v1494_v3  ;;  %2122 = vmatpush3.bf16.msra.mxu1 %v1494_v3 }
 0x379   :  { %2090 = vmatprep.subr.bf16.mxu0 %v1495_v2  ;;  %2115 = vmatprep.subr.bf16.mxu1 %v1495_v2 }
 0x37c   :  { %2091 = vmatpush3.bf16.msra.mxu0 %v1495_v2  ;;  %2123 = vmatpush3.bf16.msra.mxu1 %v1495_v2 }
 0x37f   :  { %2093 = vmatmul.mubr.bf16.vlgmr.msra.gmra.mrb[64].mxu0 %v77_v43  ;;  %2101 = vmatmul.mubr.bf16.vlgmr.msra.gmra.mrb[64].mxu1 %v81_v55 }
 0x380   :  { %2096 = vmatprep.mubr.bf16.mxu0 %v78_v41  ;;  %2104 = vmatprep.mubr.bf16.mxu1 %v82_v57 }
 0x387   :  { %2097 = vmatmul.mubr.bf16.gmra.mrb[68].mxu0 %v79_v48  ;;  %2105 = vmatmul.mubr.bf16.gmra.mrb[68].mxu1 %v83_v58 }
 0x452   :  { %v2094_v56 = vpop.f32.mrb[64].mxu0  ;;  %v2102_v43 = vpop.f32.mrb[64].mxu1 }
 0x453   :  { %v1595_v46 = vmul.f32 %v2094_v56, %v2504_v59  ;;  %v1603_v55 = vmul.f32 %v2102_v43, %v2538_v4  ;;  %v1530_v41 = vpop.f32.mrb[65].mxu0  ;;  %v1562_v5 = vpop.f32.mrb[65].mxu1 }
 0x454   :  { %v1593_v57 = vmul.f32 %v1530_v41, %v2496_v44  ;;  %v1601_v38 = vmul.f32 %v1562_v5, %v2530_v50  ;;  %v2095_v48 = vpop.f32.mrb[66].mxu0  ;;  %v2103_v6 = vpop.f32.mrb[66].mxu1 }
 0x455   :  { %v1618_v42 = vadd.f32 %v1771_v62, %v1595_v46  ;;  %v1626_v58 = vadd.f32 %v1771_v62, %v1603_v55  ;;  %v1596_v8 = vmul.f32 %v2095_v48, %v2508_v0  ;;  %v1604_v54 = vmul.f32 %v2103_v6, %v2540_v60  ;;  %v1533_v10 = vpop.f32.mrb[67].mxu0  ;;  %v1565_v11 = vpop.f32.mrb[67].mxu1 }
 0x456   :  { %v1616_v13 = vadd.f32 %v1771_v62, %v1593_v57  ;;  %v1624_v59 = vadd.f32 %v1771_v62, %v1601_v38  ;;  %v1594_v4 = vmul.f32 %v1533_v10, %v2499_v52  ;;  %v1602_v15 = vmul.f32 %v1565_v11, %v2532_v51 }
 0x457   :  { %1634 = vst [vmem:[#allocation7 + $0x10] sm:$0xff] %v1618_v42  ;;  %1642 = vst [vmem:[#allocation7 + $0x50] sm:$0xff] %v1626_v58  ;;  %v1619_v44 = vadd.f32 %v1771_v62, %v1596_v8  ;;  %v1627_v50 = vadd.f32 %v1771_v62, %v1604_v54 }
 0x458   :  { %1632 = vst [vmem:[#allocation7] sm:$0xff] %v1616_v13  ;;  %1640 = vst [vmem:[#allocation7 + $0x40] sm:$0xff] %v1624_v59  ;;  %v1617_v16 = vadd.f32 %v1771_v62, %v1594_v4  ;;  %v1625_v40 = vadd.f32 %v1771_v62, %v1602_v15 }
 0x459   :  { %1635 = vst [vmem:[#allocation7 + $0x18] sm:$0xff] %v1619_v44  ;;  %1643 = vst [vmem:[#allocation7 + $0x58] sm:$0xff] %v1627_v50 }
 0x45a   :  { %1633 = vst [vmem:[#allocation7 + $0x8] sm:$0xff] %v1617_v16  ;;  %1641 = vst [vmem:[#allocation7 + $0x48] sm:$0xff] %v1625_v40  ;;  %v2098_v0 = vpop.f32.mrb[68].mxu0  ;;  %v2106_v60 = vpop.f32.mrb[68].mxu1 }
 0x45b   :  { %v1599_v7 = vmul.f32 %v2098_v0, %v2522_v34  ;;  %v1607_v52 = vmul.f32 %v2106_v60, %v2554_v26  ;;  %v1546_v17 = vpop.f32.mrb[69].mxu0  ;;  %v1578_v51 = vpop.f32.mrb[69].mxu1 }
 0x45c   :  { %v1597_v9 = vmul.f32 %v1546_v17, %v2514_v14  ;;  %v1605_v19 = vmul.f32 %v1578_v51, %v2546_v18  ;;  %v2099_v21 = vpop.f32.mrb[70].mxu0  ;;  %v2107_v22 = vpop.f32.mrb[70].mxu1 }
 0x45d   :  { %v1622_v24 = vadd.f32 %v1771_v62, %v1599_v7  ;;  %v1630_v27 = vadd.f32 %v1771_v62, %v1607_v52  ;;  %v1600_v29 = vmul.f32 %v2099_v21, %v2524_v35  ;;  %v1608_v30 = vmul.f32 %v2107_v22, %v2556_v33  ;;  %v1549_v31 = vpop.f32.mrb[71].mxu0  ;;  %v1581_v23 = vpop.f32.mrb[71].mxu1 }
 0x45e   :  { %v1620_v34 = vadd.f32 %v1771_v62, %v1597_v9  ;;  %v1628_v26 = vadd.f32 %v1771_v62, %v1605_v19  ;;  %v1598_v32 = vmul.f32 %v1549_v31, %v2516_v20  ;;  %v1606_v14 = vmul.f32 %v1581_v23, %v2548_v12 }
 0x45f   :  { %1638 = vst [vmem:[#allocation7 + $0x30] sm:$0xff] %v1622_v24  ;;  %1646 = vst [vmem:[#allocation7 + $0x70] sm:$0xff] %v1630_v27  ;;  %v1623_v18 = vadd.f32 %v1771_v62, %v1600_v29  ;;  %v1631_v25 = vadd.f32 %v1771_v62, %v1608_v30 }
 0x460   :  { %1636 = vst [vmem:[#allocation7 + $0x20] sm:$0xff] %v1620_v34  ;;  %1644 = vst [vmem:[#allocation7 + $0x60] sm:$0xff] %v1628_v26  ;;  %v1621_v28 = vadd.f32 %v1771_v62, %v1598_v32  ;;  %v1629_v35 = vadd.f32 %v1771_v62, %v1606_v14 }
 0x461   :  { %1639 = vst [vmem:[#allocation7 + $0x38] sm:$0xff] %v1623_v18  ;;  %1647 = vst [vmem:[#allocation7 + $0x78] sm:$0xff] %v1631_v25 }
 0x462   :  { %1637 = vst [vmem:[#allocation7 + $0x28] sm:$0xff] %v1621_v28  ;;  %1645 = vst [vmem:[#allocation7 + $0x68] sm:$0xff] %v1629_v35 }
 0x463   :  { %2319 = shalt.err (!%p2316_p6)
}
 0x464   :  { %s2320_s13 = scalar_lea.hbm %s2725_s7, 2048 }
 0x465   :  { %p2321_p7 = scmp.ne.s32.totalorder %s2725_s7, %s2320_s13  ;;  %p2324_p8 = scmp.lt.u32.totalorder %s2320_s13, %s2725_s7 }
 0x467   :  { %p2326_p9 = pnand %p2324_p8, %p2321_p7 }
 0x469   :  { %2329 = shalt.err (!%p2326_p9)
}
 0x46a   :  { %s2344_s18 = smov 128   ;;  %s2345_s19 = smov 8  }
 0x46b   :  { %1659 = dma.vmem_to_hbm [thread:$0]  %s1654_s10, 2048, %s2725_s7, [#allocation4], %s2344_s18, %s2344_s18, %s2345_s19  }
 0x46c   :  { %2334 = dma.done.wait [#allocation4], 2048  }
 0x46d   :  { %2335 = vsyncadd [#allocation4], 4294965248 }
 0x46e   :  { %1663 = vsyncpa [#allocation3], 1 }
 0x46f   :  { %1664 = vsyncpa [#allocation6], 1 }
 0x470   :  { %1665 = vsyncpa [#allocation4], 1 }

</bundles_post_ra>
